<compile_context>
chip_gen: v7x
topology: tpu7x:2x2x1
jax: 0.10.0
libtpu: 0.0.40
codegen_flags: <defaults>
</compile_context>

<pallas_src>
import jax
import jax.numpy as jnp
from jax.experimental import pallas as pl
from jax.experimental.pallas import tpu as pltpu


def _round_up(x, m):
    return (x + m - 1) // m * m


def _sigmoid(x):
    # sigmoid(x) == 0.5*tanh(0.5*x) + 0.5 : single EUP op, preserves
    # sigmoid(0)=0.5 exactly (needed by the padded-lane invariant).
    return 0.5 * jnp.tanh(0.5 * x) + 0.5


def _recurrent_kernel(x_ref, h0_ref, c0_ref, wih_t_ref, whh_t_ref, b_ref,
                      wlin_t_ref, blin_ref, out_ref,
                      h_scr, c_scr, xproj_scr, hs_scr):
    Bp, Hp = h_scr.shape           # padded batch (sublane-dense), padded hidden
    Tc = x_ref.shape[0] // Bp      # static timesteps per chunk

    # ---- First chunk: load the initial (h, c) state into the carried scratch.
    @pl.when(pl.program_id(0) == 0)
    def _():
        h_scr[...] = h0_ref[...]
        c_scr[...] = c0_ref[...]

    # ---- Chunk prologue: input projection for Tc timesteps in one MXU call.
    # (Tc*Bp, F)bf16 @ (F, 4*Hp)bf16 -> f32, + pre-summed bias; parked in VMEM.
    xproj_scr[...] = (
        jnp.dot(x_ref[...], wih_t_ref[...], preferred_element_type=jnp.float32)
        + b_ref[...])

    # ---- Sequential LSTM recurrence over the chunk.  Only h @ W_hh^T and the
    # gate math sit on the serial path; (h, c) are carried in f32 vregs.
    h = h_scr[...]                 # (Bp, Hp) f32
    c = c_scr[...]                 # (Bp, Hp) f32
    for t in range(Tc):            # small static trip-count: straight-line code
        gates = (jnp.dot(h.astype(jnp.bfloat16), whh_t_ref[...],
                         preferred_element_type=jnp.float32)
                 + xproj_scr[pl.ds(t * Bp, Bp), :])          # (Bp, 4*Hp) f32
        # PyTorch gate order: input, forget, cell(g), output.
        # Each gate occupies its own lane-aligned 128-wide block -> free slices.
        i_g = _sigmoid(gates[:, 0 * Hp:1 * Hp])
        f_g = _sigmoid(gates[:, 1 * Hp:2 * Hp])
        g_g = jnp.tanh(gates[:, 2 * Hp:3 * Hp])
        o_g = _sigmoid(gates[:, 3 * Hp:4 * Hp])
        c = f_g * c + i_g * g_g
        h = o_g * jnp.tanh(c)
        hs_scr[pl.ds(t * Bp, Bp), :] = h.astype(hs_scr.dtype)

    # ---- Persist the carried state for the next chunk.
    h_scr[...] = h
    c_scr[...] = c

    # ---- Chunk epilogue: lane-dense output Linear over the chunk's timesteps.
    out_ref[...] = (
        jnp.dot(hs_scr[...], wlin_t_ref[...], preferred_element_type=jnp.float32)
        + blin_ref[...]).astype(out_ref.dtype)


def recurrent_forward(xs, h0, c0, params, *, chunk=16):
    """xs: (T, B, F) f32; h0/c0: (1, B, H) f32; returns (T, B, out_dim) f32."""
    T, B, F = xs.shape
    H = params["w_hh"].shape[1]
    O = params["w_lin"].shape[0]

    Bp = _round_up(B, 8)        # sublane-dense batch
    Hp = _round_up(H, 128)      # one lane-aligned 128-wide block per gate
    Op = _round_up(O, 128)      # lane-dense output store
    Tc = max(1, min(T, chunk))  # timesteps per grid step
    Tp = _round_up(T, Tc)       # padded sequence length (extra steps sliced off)
    n_chunks = Tp // Tc

    f32, bf16 = jnp.float32, jnp.bfloat16

    # ---- layout plumbing (zero-pad + pre-transpose + bf16 cast), wrapper-side.
    x_p = jnp.pad(xs.astype(f32), ((0, Tp - T), (0, Bp - B), (0, 0)))
    x_flat = x_p.reshape(Tp * Bp, F).astype(bf16)                 # (Tp*Bp, F)

    def pad_state(s):  # (1, B, H) -> (Bp, Hp), zero padded
        return jnp.pad(s[0].astype(f32), ((0, Bp - B), (0, Hp - H)))

    h0_p = pad_state(h0)
    c0_p = pad_state(c0)

    # W_ih: (4H, F) -> (F, 4*Hp); gate g lives in columns [g*Hp, g*Hp+H).
    w_ih4 = params["w_ih"].astype(f32).reshape(4, H, F)
    w_ih4 = jnp.pad(w_ih4, ((0, 0), (0, Hp - H), (0, 0)))
    wih_t = jnp.transpose(w_ih4, (2, 0, 1)).reshape(F, 4 * Hp).astype(bf16)

    # W_hh: (4H, H) -> (Hp, 4*Hp); padded rows/cols are zero.
    w_hh4 = params["w_hh"].astype(f32).reshape(4, H, H)
    w_hh4 = jnp.pad(w_hh4, ((0, 0), (0, Hp - H), (0, Hp - H)))
    whh_t = jnp.transpose(w_hh4, (2, 0, 1)).reshape(Hp, 4 * Hp).astype(bf16)

    # Pre-summed LSTM bias (b_ih + b_hh), gate-block padded (f32).
    b4 = (params["b_ih"] + params["b_hh"]).astype(f32).reshape(4, H)
    b = jnp.pad(b4, ((0, 0), (0, Hp - H))).reshape(1, 4 * Hp)

    # Output Linear: (O, H) -> (Hp, Op) with zero padding.
    wlin_t = jnp.pad(params["w_lin"].astype(f32).T,
                     ((0, Hp - H), (0, Op - O))).astype(bf16)     # (Hp, Op)
    blin = jnp.pad(params["b_lin"].astype(f32), (0, Op - O)).reshape(1, Op)

    # ---- VMEM budget (double-buffered pipelined operands + scratch) + headroom.
    vmem_bytes = (
        2 * (Tc * Bp * F * 2)                         # x chunk (bf16), 2 bufs
        + 2 * (Tc * Bp * Op * 4)                      # out chunk (f32), 2 bufs
        + 2 * 2 * (Bp * Hp * 4)                       # h0, c0
        + 2 * (F * 4 * Hp * 2 + Hp * 4 * Hp * 2 + 4 * Hp * 4)   # W_ih, W_hh, b
        + 2 * (Hp * Op * 2 + Op * 4)                  # W_lin, b_lin
        + 2 * (Bp * Hp * 4)                           # carried h, c scratch
        + Tc * Bp * 4 * Hp * 4                        # xproj scratch (f32)
        + Tc * Bp * Hp * 2)                           # hs scratch (bf16)
    vmem_limit = int(min(max(2 * vmem_bytes, 16 * 2**20), 48 * 2**20))

    grid_spec = pltpu.PrefetchScalarGridSpec(
        num_scalar_prefetch=0,
        grid=(n_chunks,),
        in_specs=[
            pl.BlockSpec((Tc * Bp, F), lambda i: (i, 0)),     # x chunk
            pl.BlockSpec((Bp, Hp), lambda i: (0, 0)),         # h0
            pl.BlockSpec((Bp, Hp), lambda i: (0, 0)),         # c0
            pl.BlockSpec((F, 4 * Hp), lambda i: (0, 0)),      # W_ih^T
            pl.BlockSpec((Hp, 4 * Hp), lambda i: (0, 0)),     # W_hh^T
            pl.BlockSpec((1, 4 * Hp), lambda i: (0, 0)),      # bias (summed)
            pl.BlockSpec((Hp, Op), lambda i: (0, 0)),         # W_lin^T
            pl.BlockSpec((1, Op), lambda i: (0, 0)),          # b_lin
        ],
        out_specs=pl.BlockSpec((Tc * Bp, Op), lambda i: (i, 0)),
        scratch_shapes=[
            pltpu.VMEM((Bp, Hp), f32),             # carried h across chunks
            pltpu.VMEM((Bp, Hp), f32),             # carried c across chunks
            pltpu.VMEM((Tc * Bp, 4 * Hp), f32),    # per-chunk x-projection
            pltpu.VMEM((Tc * Bp, Hp), bf16),       # per-chunk h history
        ],
    )

    out_flat = pl.pallas_call(
        _recurrent_kernel,
        out_shape=jax.ShapeDtypeStruct((Tp * Bp, Op), f32),
        grid_spec=grid_spec,
        compiler_params=pltpu.CompilerParams(
            dimension_semantics=("arbitrary",),    # sequential recurrence axis
            vmem_limit_bytes=vmem_limit),
    )(x_flat, h0_p, c0_p, wih_t, whh_t, b, wlin_t, blin)

    # Strip padding back to the module's (T, B, out_dim) output.
    return out_flat.reshape(Tp, Bp, Op)[:T, :B, :O]


def recurrent_reference(xs, h0, c0, params):
    """Pure-JAX reference mirroring PyTorch nn.LSTM + nn.Linear (eval mode)."""
    wih, whh = params["w_ih"], params["w_hh"]
    bih, bhh = params["b_ih"], params["b_hh"]
    wlin, blin = params["w_lin"], params["b_lin"]
    H = whh.shape[1]

    def step(carry, x_t):
        h, c = carry
        gates = x_t @ wih.T + bih + h @ whh.T + bhh
        i = jax.nn.sigmoid(gates[:, 0:H])
        f = jax.nn.sigmoid(gates[:, H:2 * H])
        g = jnp.tanh(gates[:, 2 * H:3 * H])
        o = jax.nn.sigmoid(gates[:, 3 * H:4 * H])
        c_new = f * c + i * g
        h_new = o * jnp.tanh(c_new)
        return (h_new, c_new), h_new

    (_, _), hs = jax.lax.scan(step, (h0[0], c0[0]), xs)
    return hs @ wlin.T + blin


def init_params(key, feat_dim, hidden_dim, out_dim):
    ks = jax.random.split(key, 6)
    s_lstm = 1.0 / jnp.sqrt(hidden_dim)
    s_lin = 1.0 / jnp.sqrt(hidden_dim)
    return {
        "w_ih": jax.random.uniform(ks[0], (4 * hidden_dim, feat_dim),
                                   jnp.float32, -s_lstm, s_lstm),
        "w_hh": jax.random.uniform(ks[1], (4 * hidden_dim, hidden_dim),
                                   jnp.float32, -s_lstm, s_lstm),
        "b_ih": jax.random.uniform(ks[2], (4 * hidden_dim,),
                                   jnp.float32, -s_lstm, s_lstm),
        "b_hh": jax.random.uniform(ks[3], (4 * hidden_dim,),
                                   jnp.float32, -s_lstm, s_lstm),
        "w_lin": jax.random.uniform(ks[4], (out_dim, hidden_dim),
                                    jnp.float32, -s_lin, s_lin),
        "b_lin": jax.random.uniform(ks[5], (out_dim,),
                                    jnp.float32, -s_lin, s_lin),
    }


if __name__ == "__main__":
    T, B, FEAT, HID, OUT = 8, 2, 4, 32, 16

    key = jax.random.PRNGKey(0)
    k_x, k_h, k_c, k_p = jax.random.split(key, 4)

    xs = jax.random.normal(k_x, (T, B, FEAT), jnp.float32)
    h0 = jax.random.normal(k_h, (1, B, HID), jnp.float32)
    c0 = jax.random.normal(k_c, (1, B, HID), jnp.float32)
    params = init_params(k_p, FEAT, HID, OUT)

    out = recurrent_forward(xs, h0, c0, params)
    out = jax.block_until_ready(out)

    ref = jax.block_until_ready(recurrent_reference(xs, h0, c0, params))
    assert out.shape == (T, B, OUT)
    # bf16 MXU operands (f32 accumulation) vs. the f32 reference -> relaxed tol.
    assert jnp.allclose(out, ref, atol=2e-2, rtol=2e-2), \
        f"max abs err {jnp.max(jnp.abs(out - ref))}"

    print("KERNEL_OK")
</pallas_src>

<mosaic_0001>
module attributes {stable_mosaic.version = 11 : i64} {
  func.func @_recurrent_kernel(%arg0: i32, %arg1: memref<64x4xbf16, #tpu.memory_space<vmem>>, %arg2: memref<8x128xf32, #tpu.memory_space<vmem>>, %arg3: memref<8x128xf32, #tpu.memory_space<vmem>>, %arg4: memref<4x512xbf16, #tpu.memory_space<vmem>>, %arg5: memref<128x512xbf16, #tpu.memory_space<vmem>>, %arg6: memref<1x512xf32, #tpu.memory_space<vmem>>, %arg7: memref<128x128xbf16, #tpu.memory_space<vmem>>, %arg8: memref<1x128xf32, #tpu.memory_space<vmem>>, %arg9: memref<64x128xf32, #tpu.memory_space<vmem>>, %arg10: memref<8x128xf32, #tpu.memory_space<vmem>>, %arg11: memref<8x128xf32, #tpu.memory_space<vmem>>, %arg12: memref<64x512xf32, #tpu.memory_space<vmem>>, %arg13: memref<64x128xbf16, #tpu.memory_space<vmem>>) attributes {dimension_semantics = [#tpu.dimension_semantics<arbitrary>], iteration_bounds = array<i64: 1>, scalar_prefetch = 0 : i64, scratch_operands = 4 : i64, tpu.core_type = #tpu.core_type<tc>, window_params = [{transform_indices = @transform_0, window_bounds = array<i64: 64, 4>}, {pipeline_mode = #tpu.pipeline_mode<synchronous>, transform_indices = @transform_1, window_bounds = array<i64: 8, 128>}, {pipeline_mode = #tpu.pipeline_mode<synchronous>, transform_indices = @transform_2, window_bounds = array<i64: 8, 128>}, {pipeline_mode = #tpu.pipeline_mode<synchronous>, transform_indices = @transform_3, window_bounds = array<i64: 4, 512>}, {pipeline_mode = #tpu.pipeline_mode<synchronous>, transform_indices = @transform_4, window_bounds = array<i64: 128, 512>}, {pipeline_mode = #tpu.pipeline_mode<synchronous>, transform_indices = @transform_5, window_bounds = array<i64: 1, 512>}, {pipeline_mode = #tpu.pipeline_mode<synchronous>, transform_indices = @transform_6, window_bounds = array<i64: 128, 128>}, {pipeline_mode = #tpu.pipeline_mode<synchronous>, transform_indices = @transform_7, window_bounds = array<i64: 1, 128>}, {transform_indices = @transform_8, window_bounds = array<i64: 64, 128>}]} {
    %c0_i32 = arith.constant 0 : i32
    %0 = arith.cmpi eq, %arg0, %c0_i32 : i32
    %1 = arith.extui %0 : i1 to i32
    %c0_i32_0 = arith.constant 0 : i32
    %2 = arith.cmpi ne, %1, %c0_i32_0 : i32
    scf.if %2 {
      %c0_146 = arith.constant 0 : index
      %c0_147 = arith.constant 0 : index
      %325 = vector.load %arg2[%c0_146, %c0_147] : memref<8x128xf32, #tpu.memory_space<vmem>>, vector<8x128xf32>
      %c0_148 = arith.constant 0 : index
      %c0_149 = arith.constant 0 : index
      %326 = vector.load %arg10[%c0_148, %c0_149] : memref<8x128xf32, #tpu.memory_space<vmem>>, vector<8x128xf32>
      tpu.vector_store %arg10[%c0_148, %c0_149], %325 {strides = array<i32>} : memref<8x128xf32, #tpu.memory_space<vmem>>, vector<8x128xf32>,
      %c0_150 = arith.constant 0 : index
      %c0_151 = arith.constant 0 : index
      %327 = vector.load %arg3[%c0_150, %c0_151] : memref<8x128xf32, #tpu.memory_space<vmem>>, vector<8x128xf32>
      %c0_152 = arith.constant 0 : index
      %c0_153 = arith.constant 0 : index
      %328 = vector.load %arg11[%c0_152, %c0_153] : memref<8x128xf32, #tpu.memory_space<vmem>>, vector<8x128xf32>
      tpu.vector_store %arg11[%c0_152, %c0_153], %327 {strides = array<i32>} : memref<8x128xf32, #tpu.memory_space<vmem>>, vector<8x128xf32>,
    } else {
    }
    %c0 = arith.constant 0 : index
    %c0_1 = arith.constant 0 : index
    %3 = vector.load %arg1[%c0, %c0_1] : memref<64x4xbf16, #tpu.memory_space<vmem>>, vector<64x4xbf16>
    %c0_2 = arith.constant 0 : index
    %c0_3 = arith.constant 0 : index
    %4 = vector.load %arg4[%c0_2, %c0_3] : memref<4x512xbf16, #tpu.memory_space<vmem>>, vector<4x512xbf16>
    %cst = arith.constant dense<0.000000e+00> : vector<64x512xf32>
    %5 = tpu.matmul %3, %4, %cst {dimension_numbers = #tpu.dot_dimension_numbers<[1], [0], [0], [1], [0, 0, 1, 1], [], []>} : vector<64x4xbf16>, vector<4x512xbf16>, vector<64x512xf32> -> vector<64x512xf32>
    %c0_4 = arith.constant 0 : index
    %c0_5 = arith.constant 0 : index
    %6 = vector.load %arg6[%c0_4, %c0_5] : memref<1x512xf32, #tpu.memory_space<vmem>>, vector<1x512xf32>
    %7 = vector.broadcast %6 : vector<1x512xf32> to vector<64x512xf32>
    %8 = arith.addf %5, %7 : vector<64x512xf32>
    %c0_6 = arith.constant 0 : index
    %c0_7 = arith.constant 0 : index
    %9 = vector.load %arg12[%c0_6, %c0_7] : memref<64x512xf32, #tpu.memory_space<vmem>>, vector<64x512xf32>
    tpu.vector_store %arg12[%c0_6, %c0_7], %8 {strides = array<i32>} : memref<64x512xf32, #tpu.memory_space<vmem>>, vector<64x512xf32>,
    %c0_8 = arith.constant 0 : index
    %c0_9 = arith.constant 0 : index
    %10 = vector.load %arg10[%c0_8, %c0_9] : memref<8x128xf32, #tpu.memory_space<vmem>>, vector<8x128xf32>
    %c0_10 = arith.constant 0 : index
    %c0_11 = arith.constant 0 : index
    %11 = vector.load %arg11[%c0_10, %c0_11] : memref<8x128xf32, #tpu.memory_space<vmem>>, vector<8x128xf32>
    %12 = arith.truncf %10 : vector<8x128xf32> to vector<8x128xbf16>
    %c0_12 = arith.constant 0 : index
    %c0_13 = arith.constant 0 : index
    %13 = vector.load %arg5[%c0_12, %c0_13] : memref<128x512xbf16, #tpu.memory_space<vmem>>, vector<128x512xbf16>
    %cst_14 = arith.constant dense<0.000000e+00> : vector<8x512xf32>
    %14 = tpu.matmul %12, %13, %cst_14 {dimension_numbers = #tpu.dot_dimension_numbers<[1], [0], [0], [1], [0, 0, 1, 1], [], []>} : vector<8x128xbf16>, vector<128x512xbf16>, vector<8x512xf32> -> vector<8x512xf32>
    %c0_15 = arith.constant 0 : index
    %c0_16 = arith.constant 0 : index
    %15 = vector.load %arg12[%c0_15, %c0_16] : memref<64x512xf32, #tpu.memory_space<vmem>>, vector<8x512xf32>
    %16 = arith.addf %14, %15 : vector<8x512xf32>
    %17 = vector.extract_strided_slice %16 {offsets = [0, 0], sizes = [8, 128], strides = [1, 1]} : vector<8x512xf32> to vector<8x128xf32>
    %cst_17 = arith.constant 5.000000e-01 : f32
    %18 = vector.broadcast %cst_17 : f32 to vector<8x128xf32>
    %19 = arith.mulf %18, %17 : vector<8x128xf32>
    %20 = math.tanh %19 : vector<8x128xf32>
    %cst_18 = arith.constant 5.000000e-01 : f32
    %21 = vector.broadcast %cst_18 : f32 to vector<8x128xf32>
    %22 = arith.mulf %21, %20 : vector<8x128xf32>
    %cst_19 = arith.constant 5.000000e-01 : f32
    %23 = vector.broadcast %cst_19 : f32 to vector<8x128xf32>
    %24 = arith.addf %22, %23 : vector<8x128xf32>
    %25 = vector.extract_strided_slice %16 {offsets = [0, 128], sizes = [8, 128], strides = [1, 1]} : vector<8x512xf32> to vector<8x128xf32>
    %cst_20 = arith.constant 5.000000e-01 : f32
    %26 = vector.broadcast %cst_20 : f32 to vector<8x128xf32>
    %27 = arith.mulf %26, %25 : vector<8x128xf32>
    %28 = math.tanh %27 : vector<8x128xf32>
    %cst_21 = arith.constant 5.000000e-01 : f32
    %29 = vector.broadcast %cst_21 : f32 to vector<8x128xf32>
    %30 = arith.mulf %29, %28 : vector<8x128xf32>
    %cst_22 = arith.constant 5.000000e-01 : f32
    %31 = vector.broadcast %cst_22 : f32 to vector<8x128xf32>
    %32 = arith.addf %30, %31 : vector<8x128xf32>
    %33 = vector.extract_strided_slice %16 {offsets = [0, 256], sizes = [8, 128], strides = [1, 1]} : vector<8x512xf32> to vector<8x128xf32>
    %34 = math.tanh %33 : vector<8x128xf32>
    %35 = vector.extract_strided_slice %16 {offsets = [0, 384], sizes = [8, 128], strides = [1, 1]} : vector<8x512xf32> to vector<8x128xf32>
    %cst_23 = arith.constant 5.000000e-01 : f32
    %36 = vector.broadcast %cst_23 : f32 to vector<8x128xf32>
    %37 = arith.mulf %36, %35 : vector<8x128xf32>
    %38 = math.tanh %37 : vector<8x128xf32>
    %cst_24 = arith.constant 5.000000e-01 : f32
    %39 = vector.broadcast %cst_24 : f32 to vector<8x128xf32>
    %40 = arith.mulf %39, %38 : vector<8x128xf32>
    %cst_25 = arith.constant 5.000000e-01 : f32
    %41 = vector.broadcast %cst_25 : f32 to vector<8x128xf32>
    %42 = arith.addf %40, %41 : vector<8x128xf32>
    %43 = arith.mulf %32, %11 : vector<8x128xf32>
    %44 = arith.mulf %24, %34 : vector<8x128xf32>
    %45 = arith.addf %43, %44 : vector<8x128xf32>
    %46 = math.tanh %45 : vector<8x128xf32>
    %47 = arith.mulf %42, %46 : vector<8x128xf32>
    %48 = arith.truncf %47 : vector<8x128xf32> to vector<8x128xbf16>
    %c0_26 = arith.constant 0 : index
    %c0_27 = arith.constant 0 : index
    %49 = vector.load %arg13[%c0_26, %c0_27] : memref<64x128xbf16, #tpu.memory_space<vmem>>, vector<8x128xbf16>
    tpu.vector_store %arg13[%c0_26, %c0_27], %48 {strides = array<i32>} : memref<64x128xbf16, #tpu.memory_space<vmem>>, vector<8x128xbf16>,
    %50 = arith.truncf %47 : vector<8x128xf32> to vector<8x128xbf16>
    %c0_28 = arith.constant 0 : index
    %c0_29 = arith.constant 0 : index
    %51 = vector.load %arg5[%c0_28, %c0_29] : memref<128x512xbf16, #tpu.memory_space<vmem>>, vector<128x512xbf16>
    %cst_30 = arith.constant dense<0.000000e+00> : vector<8x512xf32>
    %52 = tpu.matmul %50, %51, %cst_30 {dimension_numbers = #tpu.dot_dimension_numbers<[1], [0], [0], [1], [0, 0, 1, 1], [], []>} : vector<8x128xbf16>, vector<128x512xbf16>, vector<8x512xf32> -> vector<8x512xf32>
    %c8 = arith.constant 8 : index
    %c0_31 = arith.constant 0 : index
    %53 = vector.load %arg12[%c8, %c0_31] : memref<64x512xf32, #tpu.memory_space<vmem>>, vector<8x512xf32>
    %54 = arith.addf %52, %53 : vector<8x512xf32>
    %55 = vector.extract_strided_slice %54 {offsets = [0, 0], sizes = [8, 128], strides = [1, 1]} : vector<8x512xf32> to vector<8x128xf32>
    %cst_32 = arith.constant 5.000000e-01 : f32
    %56 = vector.broadcast %cst_32 : f32 to vector<8x128xf32>
    %57 = arith.mulf %56, %55 : vector<8x128xf32>
    %58 = math.tanh %57 : vector<8x128xf32>
    %cst_33 = arith.constant 5.000000e-01 : f32
    %59 = vector.broadcast %cst_33 : f32 to vector<8x128xf32>
    %60 = arith.mulf %59, %58 : vector<8x128xf32>
    %cst_34 = arith.constant 5.000000e-01 : f32
    %61 = vector.broadcast %cst_34 : f32 to vector<8x128xf32>
    %62 = arith.addf %60, %61 : vector<8x128xf32>
    %63 = vector.extract_strided_slice %54 {offsets = [0, 128], sizes = [8, 128], strides = [1, 1]} : vector<8x512xf32> to vector<8x128xf32>
    %cst_35 = arith.constant 5.000000e-01 : f32
    %64 = vector.broadcast %cst_35 : f32 to vector<8x128xf32>
    %65 = arith.mulf %64, %63 : vector<8x128xf32>
    %66 = math.tanh %65 : vector<8x128xf32>
    %cst_36 = arith.constant 5.000000e-01 : f32
    %67 = vector.broadcast %cst_36 : f32 to vector<8x128xf32>
    %68 = arith.mulf %67, %66 : vector<8x128xf32>
    %cst_37 = arith.constant 5.000000e-01 : f32
    %69 = vector.broadcast %cst_37 : f32 to vector<8x128xf32>
    %70 = arith.addf %68, %69 : vector<8x128xf32>
    %71 = vector.extract_strided_slice %54 {offsets = [0, 256], sizes = [8, 128], strides = [1, 1]} : vector<8x512xf32> to vector<8x128xf32>
    %72 = math.tanh %71 : vector<8x128xf32>
    %73 = vector.extract_strided_slice %54 {offsets = [0, 384], sizes = [8, 128], strides = [1, 1]} : vector<8x512xf32> to vector<8x128xf32>
    %cst_38 = arith.constant 5.000000e-01 : f32
    %74 = vector.broadcast %cst_38 : f32 to vector<8x128xf32>
    %75 = arith.mulf %74, %73 : vector<8x128xf32>
    %76 = math.tanh %75 : vector<8x128xf32>
    %cst_39 = arith.constant 5.000000e-01 : f32
    %77 = vector.broadcast %cst_39 : f32 to vector<8x128xf32>
    %78 = arith.mulf %77, %76 : vector<8x128xf32>
    %cst_40 = arith.constant 5.000000e-01 : f32
    %79 = vector.broadcast %cst_40 : f32 to vector<8x128xf32>
    %80 = arith.addf %78, %79 : vector<8x128xf32>
    %81 = arith.mulf %70, %45 : vector<8x128xf32>
    %82 = arith.mulf %62, %72 : vector<8x128xf32>
    %83 = arith.addf %81, %82 : vector<8x128xf32>
    %84 = math.tanh %83 : vector<8x128xf32>
    %85 = arith.mulf %80, %84 : vector<8x128xf32>
    %86 = arith.truncf %85 : vector<8x128xf32> to vector<8x128xbf16>
    %c8_41 = arith.constant 8 : index
    %c0_42 = arith.constant 0 : index
    %87 = vector.load %arg13[%c8_41, %c0_42] : memref<64x128xbf16, #tpu.memory_space<vmem>>, vector<8x128xbf16>
    tpu.vector_store %arg13[%c8_41, %c0_42], %86 {strides = array<i32>} : memref<64x128xbf16, #tpu.memory_space<vmem>>, vector<8x128xbf16>,
    %88 = arith.truncf %85 : vector<8x128xf32> to vector<8x128xbf16>
    %c0_43 = arith.constant 0 : index
    %c0_44 = arith.constant 0 : index
    %89 = vector.load %arg5[%c0_43, %c0_44] : memref<128x512xbf16, #tpu.memory_space<vmem>>, vector<128x512xbf16>
    %cst_45 = arith.constant dense<0.000000e+00> : vector<8x512xf32>
    %90 = tpu.matmul %88, %89, %cst_45 {dimension_numbers = #tpu.dot_dimension_numbers<[1], [0], [0], [1], [0, 0, 1, 1], [], []>} : vector<8x128xbf16>, vector<128x512xbf16>, vector<8x512xf32> -> vector<8x512xf32>
    %c16 = arith.constant 16 : index
    %c0_46 = arith.constant 0 : index
    %91 = vector.load %arg12[%c16, %c0_46] : memref<64x512xf32, #tpu.memory_space<vmem>>, vector<8x512xf32>
    %92 = arith.addf %90, %91 : vector<8x512xf32>
    %93 = vector.extract_strided_slice %92 {offsets = [0, 0], sizes = [8, 128], strides = [1, 1]} : vector<8x512xf32> to vector<8x128xf32>
    %cst_47 = arith.constant 5.000000e-01 : f32
    %94 = vector.broadcast %cst_47 : f32 to vector<8x128xf32>
    %95 = arith.mulf %94, %93 : vector<8x128xf32>
    %96 = math.tanh %95 : vector<8x128xf32>
    %cst_48 = arith.constant 5.000000e-01 : f32
    %97 = vector.broadcast %cst_48 : f32 to vector<8x128xf32>
    %98 = arith.mulf %97, %96 : vector<8x128xf32>
    %cst_49 = arith.constant 5.000000e-01 : f32
    %99 = vector.broadcast %cst_49 : f32 to vector<8x128xf32>
    %100 = arith.addf %98, %99 : vector<8x128xf32>
    %101 = vector.extract_strided_slice %92 {offsets = [0, 128], sizes = [8, 128], strides = [1, 1]} : vector<8x512xf32> to vector<8x128xf32>
    %cst_50 = arith.constant 5.000000e-01 : f32
    %102 = vector.broadcast %cst_50 : f32 to vector<8x128xf32>
    %103 = arith.mulf %102, %101 : vector<8x128xf32>
    %104 = math.tanh %103 : vector<8x128xf32>
    %cst_51 = arith.constant 5.000000e-01 : f32
    %105 = vector.broadcast %cst_51 : f32 to vector<8x128xf32>
    %106 = arith.mulf %105, %104 : vector<8x128xf32>
    %cst_52 = arith.constant 5.000000e-01 : f32
    %107 = vector.broadcast %cst_52 : f32 to vector<8x128xf32>
    %108 = arith.addf %106, %107 : vector<8x128xf32>
    %109 = vector.extract_strided_slice %92 {offsets = [0, 256], sizes = [8, 128], strides = [1, 1]} : vector<8x512xf32> to vector<8x128xf32>
    %110 = math.tanh %109 : vector<8x128xf32>
    %111 = vector.extract_strided_slice %92 {offsets = [0, 384], sizes = [8, 128], strides = [1, 1]} : vector<8x512xf32> to vector<8x128xf32>
    %cst_53 = arith.constant 5.000000e-01 : f32
    %112 = vector.broadcast %cst_53 : f32 to vector<8x128xf32>
    %113 = arith.mulf %112, %111 : vector<8x128xf32>
    %114 = math.tanh %113 : vector<8x128xf32>
    %cst_54 = arith.constant 5.000000e-01 : f32
    %115 = vector.broadcast %cst_54 : f32 to vector<8x128xf32>
    %116 = arith.mulf %115, %114 : vector<8x128xf32>
    %cst_55 = arith.constant 5.000000e-01 : f32
    %117 = vector.broadcast %cst_55 : f32 to vector<8x128xf32>
    %118 = arith.addf %116, %117 : vector<8x128xf32>
    %119 = arith.mulf %108, %83 : vector<8x128xf32>
    %120 = arith.mulf %100, %110 : vector<8x128xf32>
    %121 = arith.addf %119, %120 : vector<8x128xf32>
    %122 = math.tanh %121 : vector<8x128xf32>
    %123 = arith.mulf %118, %122 : vector<8x128xf32>
    %124 = arith.truncf %123 : vector<8x128xf32> to vector<8x128xbf16>
    %c16_56 = arith.constant 16 : index
    %c0_57 = arith.constant 0 : index
    %125 = vector.load %arg13[%c16_56, %c0_57] : memref<64x128xbf16, #tpu.memory_space<vmem>>, vector<8x128xbf16>
    tpu.vector_store %arg13[%c16_56, %c0_57], %124 {strides = array<i32>} : memref<64x128xbf16, #tpu.memory_space<vmem>>, vector<8x128xbf16>,
    %126 = arith.truncf %123 : vector<8x128xf32> to vector<8x128xbf16>
    %c0_58 = arith.constant 0 : index
    %c0_59 = arith.constant 0 : index
    %127 = vector.load %arg5[%c0_58, %c0_59] : memref<128x512xbf16, #tpu.memory_space<vmem>>, vector<128x512xbf16>
    %cst_60 = arith.constant dense<0.000000e+00> : vector<8x512xf32>
    %128 = tpu.matmul %126, %127, %cst_60 {dimension_numbers = #tpu.dot_dimension_numbers<[1], [0], [0], [1], [0, 0, 1, 1], [], []>} : vector<8x128xbf16>, vector<128x512xbf16>, vector<8x512xf32> -> vector<8x512xf32>
    %c24 = arith.constant 24 : index
    %c0_61 = arith.constant 0 : index
    %129 = vector.load %arg12[%c24, %c0_61] : memref<64x512xf32, #tpu.memory_space<vmem>>, vector<8x512xf32>
    %130 = arith.addf %128, %129 : vector<8x512xf32>
    %131 = vector.extract_strided_slice %130 {offsets = [0, 0], sizes = [8, 128], strides = [1, 1]} : vector<8x512xf32> to vector<8x128xf32>
    %cst_62 = arith.constant 5.000000e-01 : f32
    %132 = vector.broadcast %cst_62 : f32 to vector<8x128xf32>
    %133 = arith.mulf %132, %131 : vector<8x128xf32>
    %134 = math.tanh %133 : vector<8x128xf32>
    %cst_63 = arith.constant 5.000000e-01 : f32
    %135 = vector.broadcast %cst_63 : f32 to vector<8x128xf32>
    %136 = arith.mulf %135, %134 : vector<8x128xf32>
    %cst_64 = arith.constant 5.000000e-01 : f32
    %137 = vector.broadcast %cst_64 : f32 to vector<8x128xf32>
    %138 = arith.addf %136, %137 : vector<8x128xf32>
    %139 = vector.extract_strided_slice %130 {offsets = [0, 128], sizes = [8, 128], strides = [1, 1]} : vector<8x512xf32> to vector<8x128xf32>
    %cst_65 = arith.constant 5.000000e-01 : f32
    %140 = vector.broadcast %cst_65 : f32 to vector<8x128xf32>
    %141 = arith.mulf %140, %139 : vector<8x128xf32>
    %142 = math.tanh %141 : vector<8x128xf32>
    %cst_66 = arith.constant 5.000000e-01 : f32
    %143 = vector.broadcast %cst_66 : f32 to vector<8x128xf32>
    %144 = arith.mulf %143, %142 : vector<8x128xf32>
    %cst_67 = arith.constant 5.000000e-01 : f32
    %145 = vector.broadcast %cst_67 : f32 to vector<8x128xf32>
    %146 = arith.addf %144, %145 : vector<8x128xf32>
    %147 = vector.extract_strided_slice %130 {offsets = [0, 256], sizes = [8, 128], strides = [1, 1]} : vector<8x512xf32> to vector<8x128xf32>
    %148 = math.tanh %147 : vector<8x128xf32>
    %149 = vector.extract_strided_slice %130 {offsets = [0, 384], sizes = [8, 128], strides = [1, 1]} : vector<8x512xf32> to vector<8x128xf32>
    %cst_68 = arith.constant 5.000000e-01 : f32
    %150 = vector.broadcast %cst_68 : f32 to vector<8x128xf32>
    %151 = arith.mulf %150, %149 : vector<8x128xf32>
    %152 = math.tanh %151 : vector<8x128xf32>
    %cst_69 = arith.constant 5.000000e-01 : f32
    %153 = vector.broadcast %cst_69 : f32 to vector<8x128xf32>
    %154 = arith.mulf %153, %152 : vector<8x128xf32>
    %cst_70 = arith.constant 5.000000e-01 : f32
    %155 = vector.broadcast %cst_70 : f32 to vector<8x128xf32>
    %156 = arith.addf %154, %155 : vector<8x128xf32>
    %157 = arith.mulf %146, %121 : vector<8x128xf32>
    %158 = arith.mulf %138, %148 : vector<8x128xf32>
    %159 = arith.addf %157, %158 : vector<8x128xf32>
    %160 = math.tanh %159 : vector<8x128xf32>
    %161 = arith.mulf %156, %160 : vector<8x128xf32>
    %162 = arith.truncf %161 : vector<8x128xf32> to vector<8x128xbf16>
    %c24_71 = arith.constant 24 : index
    %c0_72 = arith.constant 0 : index
    %163 = vector.load %arg13[%c24_71, %c0_72] : memref<64x128xbf16, #tpu.memory_space<vmem>>, vector<8x128xbf16>
    tpu.vector_store %arg13[%c24_71, %c0_72], %162 {strides = array<i32>} : memref<64x128xbf16, #tpu.memory_space<vmem>>, vector<8x128xbf16>,
    %164 = arith.truncf %161 : vector<8x128xf32> to vector<8x128xbf16>
    %c0_73 = arith.constant 0 : index
    %c0_74 = arith.constant 0 : index
    %165 = vector.load %arg5[%c0_73, %c0_74] : memref<128x512xbf16, #tpu.memory_space<vmem>>, vector<128x512xbf16>
    %cst_75 = arith.constant dense<0.000000e+00> : vector<8x512xf32>
    %166 = tpu.matmul %164, %165, %cst_75 {dimension_numbers = #tpu.dot_dimension_numbers<[1], [0], [0], [1], [0, 0, 1, 1], [], []>} : vector<8x128xbf16>, vector<128x512xbf16>, vector<8x512xf32> -> vector<8x512xf32>
    %c32 = arith.constant 32 : index
    %c0_76 = arith.constant 0 : index
    %167 = vector.load %arg12[%c32, %c0_76] : memref<64x512xf32, #tpu.memory_space<vmem>>, vector<8x512xf32>
    %168 = arith.addf %166, %167 : vector<8x512xf32>
    %169 = vector.extract_strided_slice %168 {offsets = [0, 0], sizes = [8, 128], strides = [1, 1]} : vector<8x512xf32> to vector<8x128xf32>
    %cst_77 = arith.constant 5.000000e-01 : f32
    %170 = vector.broadcast %cst_77 : f32 to vector<8x128xf32>
    %171 = arith.mulf %170, %169 : vector<8x128xf32>
    %172 = math.tanh %171 : vector<8x128xf32>
    %cst_78 = arith.constant 5.000000e-01 : f32
    %173 = vector.broadcast %cst_78 : f32 to vector<8x128xf32>
    %174 = arith.mulf %173, %172 : vector<8x128xf32>
    %cst_79 = arith.constant 5.000000e-01 : f32
    %175 = vector.broadcast %cst_79 : f32 to vector<8x128xf32>
    %176 = arith.addf %174, %175 : vector<8x128xf32>
    %177 = vector.extract_strided_slice %168 {offsets = [0, 128], sizes = [8, 128], strides = [1, 1]} : vector<8x512xf32> to vector<8x128xf32>
    %cst_80 = arith.constant 5.000000e-01 : f32
    %178 = vector.broadcast %cst_80 : f32 to vector<8x128xf32>
    %179 = arith.mulf %178, %177 : vector<8x128xf32>
    %180 = math.tanh %179 : vector<8x128xf32>
    %cst_81 = arith.constant 5.000000e-01 : f32
    %181 = vector.broadcast %cst_81 : f32 to vector<8x128xf32>
    %182 = arith.mulf %181, %180 : vector<8x128xf32>
    %cst_82 = arith.constant 5.000000e-01 : f32
    %183 = vector.broadcast %cst_82 : f32 to vector<8x128xf32>
    %184 = arith.addf %182, %183 : vector<8x128xf32>
    %185 = vector.extract_strided_slice %168 {offsets = [0, 256], sizes = [8, 128], strides = [1, 1]} : vector<8x512xf32> to vector<8x128xf32>
    %186 = math.tanh %185 : vector<8x128xf32>
    %187 = vector.extract_strided_slice %168 {offsets = [0, 384], sizes = [8, 128], strides = [1, 1]} : vector<8x512xf32> to vector<8x128xf32>
    %cst_83 = arith.constant 5.000000e-01 : f32
    %188 = vector.broadcast %cst_83 : f32 to vector<8x128xf32>
    %189 = arith.mulf %188, %187 : vector<8x128xf32>
    %190 = math.tanh %189 : vector<8x128xf32>
    %cst_84 = arith.constant 5.000000e-01 : f32
    %191 = vector.broadcast %cst_84 : f32 to vector<8x128xf32>
    %192 = arith.mulf %191, %190 : vector<8x128xf32>
    %cst_85 = arith.constant 5.000000e-01 : f32
    %193 = vector.broadcast %cst_85 : f32 to vector<8x128xf32>
    %194 = arith.addf %192, %193 : vector<8x128xf32>
    %195 = arith.mulf %184, %159 : vector<8x128xf32>
    %196 = arith.mulf %176, %186 : vector<8x128xf32>
    %197 = arith.addf %195, %196 : vector<8x128xf32>
    %198 = math.tanh %197 : vector<8x128xf32>
    %199 = arith.mulf %194, %198 : vector<8x128xf32>
    %200 = arith.truncf %199 : vector<8x128xf32> to vector<8x128xbf16>
    %c32_86 = arith.constant 32 : index
    %c0_87 = arith.constant 0 : index
    %201 = vector.load %arg13[%c32_86, %c0_87] : memref<64x128xbf16, #tpu.memory_space<vmem>>, vector<8x128xbf16>
    tpu.vector_store %arg13[%c32_86, %c0_87], %200 {strides = array<i32>} : memref<64x128xbf16, #tpu.memory_space<vmem>>, vector<8x128xbf16>,
    %202 = arith.truncf %199 : vector<8x128xf32> to vector<8x128xbf16>
    %c0_88 = arith.constant 0 : index
    %c0_89 = arith.constant 0 : index
    %203 = vector.load %arg5[%c0_88, %c0_89] : memref<128x512xbf16, #tpu.memory_space<vmem>>, vector<128x512xbf16>
    %cst_90 = arith.constant dense<0.000000e+00> : vector<8x512xf32>
    %204 = tpu.matmul %202, %203, %cst_90 {dimension_numbers = #tpu.dot_dimension_numbers<[1], [0], [0], [1], [0, 0, 1, 1], [], []>} : vector<8x128xbf16>, vector<128x512xbf16>, vector<8x512xf32> -> vector<8x512xf32>
    %c40 = arith.constant 40 : index
    %c0_91 = arith.constant 0 : index
    %205 = vector.load %arg12[%c40, %c0_91] : memref<64x512xf32, #tpu.memory_space<vmem>>, vector<8x512xf32>
    %206 = arith.addf %204, %205 : vector<8x512xf32>
    %207 = vector.extract_strided_slice %206 {offsets = [0, 0], sizes = [8, 128], strides = [1, 1]} : vector<8x512xf32> to vector<8x128xf32>
    %cst_92 = arith.constant 5.000000e-01 : f32
    %208 = vector.broadcast %cst_92 : f32 to vector<8x128xf32>
    %209 = arith.mulf %208, %207 : vector<8x128xf32>
    %210 = math.tanh %209 : vector<8x128xf32>
    %cst_93 = arith.constant 5.000000e-01 : f32
    %211 = vector.broadcast %cst_93 : f32 to vector<8x128xf32>
    %212 = arith.mulf %211, %210 : vector<8x128xf32>
    %cst_94 = arith.constant 5.000000e-01 : f32
    %213 = vector.broadcast %cst_94 : f32 to vector<8x128xf32>
    %214 = arith.addf %212, %213 : vector<8x128xf32>
    %215 = vector.extract_strided_slice %206 {offsets = [0, 128], sizes = [8, 128], strides = [1, 1]} : vector<8x512xf32> to vector<8x128xf32>
    %cst_95 = arith.constant 5.000000e-01 : f32
    %216 = vector.broadcast %cst_95 : f32 to vector<8x128xf32>
    %217 = arith.mulf %216, %215 : vector<8x128xf32>
    %218 = math.tanh %217 : vector<8x128xf32>
    %cst_96 = arith.constant 5.000000e-01 : f32
    %219 = vector.broadcast %cst_96 : f32 to vector<8x128xf32>
    %220 = arith.mulf %219, %218 : vector<8x128xf32>
    %cst_97 = arith.constant 5.000000e-01 : f32
    %221 = vector.broadcast %cst_97 : f32 to vector<8x128xf32>
    %222 = arith.addf %220, %221 : vector<8x128xf32>
    %223 = vector.extract_strided_slice %206 {offsets = [0, 256], sizes = [8, 128], strides = [1, 1]} : vector<8x512xf32> to vector<8x128xf32>
    %224 = math.tanh %223 : vector<8x128xf32>
    %225 = vector.extract_strided_slice %206 {offsets = [0, 384], sizes = [8, 128], strides = [1, 1]} : vector<8x512xf32> to vector<8x128xf32>
    %cst_98 = arith.constant 5.000000e-01 : f32
    %226 = vector.broadcast %cst_98 : f32 to vector<8x128xf32>
    %227 = arith.mulf %226, %225 : vector<8x128xf32>
    %228 = math.tanh %227 : vector<8x128xf32>
    %cst_99 = arith.constant 5.000000e-01 : f32
    %229 = vector.broadcast %cst_99 : f32 to vector<8x128xf32>
    %230 = arith.mulf %229, %228 : vector<8x128xf32>
    %cst_100 = arith.constant 5.000000e-01 : f32
    %231 = vector.broadcast %cst_100 : f32 to vector<8x128xf32>
    %232 = arith.addf %230, %231 : vector<8x128xf32>
    %233 = arith.mulf %222, %197 : vector<8x128xf32>
    %234 = arith.mulf %214, %224 : vector<8x128xf32>
    %235 = arith.addf %233, %234 : vector<8x128xf32>
    %236 = math.tanh %235 : vector<8x128xf32>
    %237 = arith.mulf %232, %236 : vector<8x128xf32>
    %238 = arith.truncf %237 : vector<8x128xf32> to vector<8x128xbf16>
    %c40_101 = arith.constant 40 : index
    %c0_102 = arith.constant 0 : index
    %239 = vector.load %arg13[%c40_101, %c0_102] : memref<64x128xbf16, #tpu.memory_space<vmem>>, vector<8x128xbf16>
    tpu.vector_store %arg13[%c40_101, %c0_102], %238 {strides = array<i32>} : memref<64x128xbf16, #tpu.memory_space<vmem>>, vector<8x128xbf16>,
    %240 = arith.truncf %237 : vector<8x128xf32> to vector<8x128xbf16>
    %c0_103 = arith.constant 0 : index
    %c0_104 = arith.constant 0 : index
    %241 = vector.load %arg5[%c0_103, %c0_104] : memref<128x512xbf16, #tpu.memory_space<vmem>>, vector<128x512xbf16>
    %cst_105 = arith.constant dense<0.000000e+00> : vector<8x512xf32>
    %242 = tpu.matmul %240, %241, %cst_105 {dimension_numbers = #tpu.dot_dimension_numbers<[1], [0], [0], [1], [0, 0, 1, 1], [], []>} : vector<8x128xbf16>, vector<128x512xbf16>, vector<8x512xf32> -> vector<8x512xf32>
    %c48 = arith.constant 48 : index
    %c0_106 = arith.constant 0 : index
    %243 = vector.load %arg12[%c48, %c0_106] : memref<64x512xf32, #tpu.memory_space<vmem>>, vector<8x512xf32>
    %244 = arith.addf %242, %243 : vector<8x512xf32>
    %245 = vector.extract_strided_slice %244 {offsets = [0, 0], sizes = [8, 128], strides = [1, 1]} : vector<8x512xf32> to vector<8x128xf32>
    %cst_107 = arith.constant 5.000000e-01 : f32
    %246 = vector.broadcast %cst_107 : f32 to vector<8x128xf32>
    %247 = arith.mulf %246, %245 : vector<8x128xf32>
    %248 = math.tanh %247 : vector<8x128xf32>
    %cst_108 = arith.constant 5.000000e-01 : f32
    %249 = vector.broadcast %cst_108 : f32 to vector<8x128xf32>
    %250 = arith.mulf %249, %248 : vector<8x128xf32>
    %cst_109 = arith.constant 5.000000e-01 : f32
    %251 = vector.broadcast %cst_109 : f32 to vector<8x128xf32>
    %252 = arith.addf %250, %251 : vector<8x128xf32>
    %253 = vector.extract_strided_slice %244 {offsets = [0, 128], sizes = [8, 128], strides = [1, 1]} : vector<8x512xf32> to vector<8x128xf32>
    %cst_110 = arith.constant 5.000000e-01 : f32
    %254 = vector.broadcast %cst_110 : f32 to vector<8x128xf32>
    %255 = arith.mulf %254, %253 : vector<8x128xf32>
    %256 = math.tanh %255 : vector<8x128xf32>
    %cst_111 = arith.constant 5.000000e-01 : f32
    %257 = vector.broadcast %cst_111 : f32 to vector<8x128xf32>
    %258 = arith.mulf %257, %256 : vector<8x128xf32>
    %cst_112 = arith.constant 5.000000e-01 : f32
    %259 = vector.broadcast %cst_112 : f32 to vector<8x128xf32>
    %260 = arith.addf %258, %259 : vector<8x128xf32>
    %261 = vector.extract_strided_slice %244 {offsets = [0, 256], sizes = [8, 128], strides = [1, 1]} : vector<8x512xf32> to vector<8x128xf32>
    %262 = math.tanh %261 : vector<8x128xf32>
    %263 = vector.extract_strided_slice %244 {offsets = [0, 384], sizes = [8, 128], strides = [1, 1]} : vector<8x512xf32> to vector<8x128xf32>
    %cst_113 = arith.constant 5.000000e-01 : f32
    %264 = vector.broadcast %cst_113 : f32 to vector<8x128xf32>
    %265 = arith.mulf %264, %263 : vector<8x128xf32>
    %266 = math.tanh %265 : vector<8x128xf32>
    %cst_114 = arith.constant 5.000000e-01 : f32
    %267 = vector.broadcast %cst_114 : f32 to vector<8x128xf32>
    %268 = arith.mulf %267, %266 : vector<8x128xf32>
    %cst_115 = arith.constant 5.000000e-01 : f32
    %269 = vector.broadcast %cst_115 : f32 to vector<8x128xf32>
    %270 = arith.addf %268, %269 : vector<8x128xf32>
    %271 = arith.mulf %260, %235 : vector<8x128xf32>
    %272 = arith.mulf %252, %262 : vector<8x128xf32>
    %273 = arith.addf %271, %272 : vector<8x128xf32>
    %274 = math.tanh %273 : vector<8x128xf32>
    %275 = arith.mulf %270, %274 : vector<8x128xf32>
    %276 = arith.truncf %275 : vector<8x128xf32> to vector<8x128xbf16>
    %c48_116 = arith.constant 48 : index
    %c0_117 = arith.constant 0 : index
    %277 = vector.load %arg13[%c48_116, %c0_117] : memref<64x128xbf16, #tpu.memory_space<vmem>>, vector<8x128xbf16>
    tpu.vector_store %arg13[%c48_116, %c0_117], %276 {strides = array<i32>} : memref<64x128xbf16, #tpu.memory_space<vmem>>, vector<8x128xbf16>,
    %278 = arith.truncf %275 : vector<8x128xf32> to vector<8x128xbf16>
    %c0_118 = arith.constant 0 : index
    %c0_119 = arith.constant 0 : index
    %279 = vector.load %arg5[%c0_118, %c0_119] : memref<128x512xbf16, #tpu.memory_space<vmem>>, vector<128x512xbf16>
    %cst_120 = arith.constant dense<0.000000e+00> : vector<8x512xf32>
    %280 = tpu.matmul %278, %279, %cst_120 {dimension_numbers = #tpu.dot_dimension_numbers<[1], [0], [0], [1], [0, 0, 1, 1], [], []>} : vector<8x128xbf16>, vector<128x512xbf16>, vector<8x512xf32> -> vector<8x512xf32>
    %c56 = arith.constant 56 : index
    %c0_121 = arith.constant 0 : index
    %281 = vector.load %arg12[%c56, %c0_121] : memref<64x512xf32, #tpu.memory_space<vmem>>, vector<8x512xf32>
    %282 = arith.addf %280, %281 : vector<8x512xf32>
    %283 = vector.extract_strided_slice %282 {offsets = [0, 0], sizes = [8, 128], strides = [1, 1]} : vector<8x512xf32> to vector<8x128xf32>
    %cst_122 = arith.constant 5.000000e-01 : f32
    %284 = vector.broadcast %cst_122 : f32 to vector<8x128xf32>
    %285 = arith.mulf %284, %283 : vector<8x128xf32>
    %286 = math.tanh %285 : vector<8x128xf32>
    %cst_123 = arith.constant 5.000000e-01 : f32
    %287 = vector.broadcast %cst_123 : f32 to vector<8x128xf32>
    %288 = arith.mulf %287, %286 : vector<8x128xf32>
    %cst_124 = arith.constant 5.000000e-01 : f32
    %289 = vector.broadcast %cst_124 : f32 to vector<8x128xf32>
    %290 = arith.addf %288, %289 : vector<8x128xf32>
    %291 = vector.extract_strided_slice %282 {offsets = [0, 128], sizes = [8, 128], strides = [1, 1]} : vector<8x512xf32> to vector<8x128xf32>
    %cst_125 = arith.constant 5.000000e-01 : f32
    %292 = vector.broadcast %cst_125 : f32 to vector<8x128xf32>
    %293 = arith.mulf %292, %291 : vector<8x128xf32>
    %294 = math.tanh %293 : vector<8x128xf32>
    %cst_126 = arith.constant 5.000000e-01 : f32
    %295 = vector.broadcast %cst_126 : f32 to vector<8x128xf32>
    %296 = arith.mulf %295, %294 : vector<8x128xf32>
    %cst_127 = arith.constant 5.000000e-01 : f32
    %297 = vector.broadcast %cst_127 : f32 to vector<8x128xf32>
    %298 = arith.addf %296, %297 : vector<8x128xf32>
    %299 = vector.extract_strided_slice %282 {offsets = [0, 256], sizes = [8, 128], strides = [1, 1]} : vector<8x512xf32> to vector<8x128xf32>
    %300 = math.tanh %299 : vector<8x128xf32>
    %301 = vector.extract_strided_slice %282 {offsets = [0, 384], sizes = [8, 128], strides = [1, 1]} : vector<8x512xf32> to vector<8x128xf32>
    %cst_128 = arith.constant 5.000000e-01 : f32
    %302 = vector.broadcast %cst_128 : f32 to vector<8x128xf32>
    %303 = arith.mulf %302, %301 : vector<8x128xf32>
    %304 = math.tanh %303 : vector<8x128xf32>
    %cst_129 = arith.constant 5.000000e-01 : f32
    %305 = vector.broadcast %cst_129 : f32 to vector<8x128xf32>
    %306 = arith.mulf %305, %304 : vector<8x128xf32>
    %cst_130 = arith.constant 5.000000e-01 : f32
    %307 = vector.broadcast %cst_130 : f32 to vector<8x128xf32>
    %308 = arith.addf %306, %307 : vector<8x128xf32>
    %309 = arith.mulf %298, %273 : vector<8x128xf32>
    %310 = arith.mulf %290, %300 : vector<8x128xf32>
    %311 = arith.addf %309, %310 : vector<8x128xf32>
    %312 = math.tanh %311 : vector<8x128xf32>
    %313 = arith.mulf %308, %312 : vector<8x128xf32>
    %314 = arith.truncf %313 : vector<8x128xf32> to vector<8x128xbf16>
    %c56_131 = arith.constant 56 : index
    %c0_132 = arith.constant 0 : index
    %315 = vector.load %arg13[%c56_131, %c0_132] : memref<64x128xbf16, #tpu.memory_space<vmem>>, vector<8x128xbf16>
    tpu.vector_store %arg13[%c56_131, %c0_132], %314 {strides = array<i32>} : memref<64x128xbf16, #tpu.memory_space<vmem>>, vector<8x128xbf16>,
    %c0_133 = arith.constant 0 : index
    %c0_134 = arith.constant 0 : index
    %316 = vector.load %arg10[%c0_133, %c0_134] : memref<8x128xf32, #tpu.memory_space<vmem>>, vector<8x128xf32>
    tpu.vector_store %arg10[%c0_133, %c0_134], %313 {strides = array<i32>} : memref<8x128xf32, #tpu.memory_space<vmem>>, vector<8x128xf32>,
    %c0_135 = arith.constant 0 : index
    %c0_136 = arith.constant 0 : index
    %317 = vector.load %arg11[%c0_135, %c0_136] : memref<8x128xf32, #tpu.memory_space<vmem>>, vector<8x128xf32>
    tpu.vector_store %arg11[%c0_135, %c0_136], %311 {strides = array<i32>} : memref<8x128xf32, #tpu.memory_space<vmem>>, vector<8x128xf32>,
    %c0_137 = arith.constant 0 : index
    %c0_138 = arith.constant 0 : index
    %318 = vector.load %arg13[%c0_137, %c0_138] : memref<64x128xbf16, #tpu.memory_space<vmem>>, vector<64x128xbf16>
    %c0_139 = arith.constant 0 : index
    %c0_140 = arith.constant 0 : index
    %319 = vector.load %arg7[%c0_139, %c0_140] : memref<128x128xbf16, #tpu.memory_space<vmem>>, vector<128x128xbf16>
    %cst_141 = arith.constant dense<0.000000e+00> : vector<64x128xf32>
    %320 = tpu.matmul %318, %319, %cst_141 {dimension_numbers = #tpu.dot_dimension_numbers<[1], [0], [0], [1], [0, 0, 1, 1], [], []>} : vector<64x128xbf16>, vector<128x128xbf16>, vector<64x128xf32> -> vector<64x128xf32>
    %c0_142 = arith.constant 0 : index
    %c0_143 = arith.constant 0 : index
    %321 = vector.load %arg8[%c0_142, %c0_143] : memref<1x128xf32, #tpu.memory_space<vmem>>, vector<1x128xf32>
    %322 = vector.broadcast %321 : vector<1x128xf32> to vector<64x128xf32>
    %323 = arith.addf %320, %322 : vector<64x128xf32>
    %c0_144 = arith.constant 0 : index
    %c0_145 = arith.constant 0 : index
    %324 = vector.load %arg9[%c0_144, %c0_145] : memref<64x128xf32, #tpu.memory_space<vmem>>, vector<64x128xf32>
    tpu.vector_store %arg9[%c0_144, %c0_145], %323 {strides = array<i32>} : memref<64x128xf32, #tpu.memory_space<vmem>>, vector<64x128xf32>,
    return
  }
  func.func @transform_0(%arg0: i32) -> (i32, i32) {
    %c0_i32 = arith.constant 0 : i32
    %c0_i32_0 = arith.constant 0 : i32
    return %arg0, %c0_i32 : i32, i32
  }
  func.func @transform_1(%arg0: i32) -> (i32, i32) {
    %c0_i32 = arith.constant 0 : i32
    %c0_i32_0 = arith.constant 0 : i32
    %c0_i32_1 = arith.constant 0 : i32
    return %c0_i32, %c0_i32_0 : i32, i32
  }
  func.func @transform_2(%arg0: i32) -> (i32, i32) {
    %c0_i32 = arith.constant 0 : i32
    %c0_i32_0 = arith.constant 0 : i32
    %c0_i32_1 = arith.constant 0 : i32
    return %c0_i32, %c0_i32_0 : i32, i32
  }
  func.func @transform_3(%arg0: i32) -> (i32, i32) {
    %c0_i32 = arith.constant 0 : i32
    %c0_i32_0 = arith.constant 0 : i32
    %c0_i32_1 = arith.constant 0 : i32
    return %c0_i32, %c0_i32_0 : i32, i32
  }
  func.func @transform_4(%arg0: i32) -> (i32, i32) {
    %c0_i32 = arith.constant 0 : i32
    %c0_i32_0 = arith.constant 0 : i32
    %c0_i32_1 = arith.constant 0 : i32
    return %c0_i32, %c0_i32_0 : i32, i32
  }
  func.func @transform_5(%arg0: i32) -> (i32, i32) {
    %c0_i32 = arith.constant 0 : i32
    %c0_i32_0 = arith.constant 0 : i32
    %c0_i32_1 = arith.constant 0 : i32
    return %c0_i32, %c0_i32_0 : i32, i32
  }
  func.func @transform_6(%arg0: i32) -> (i32, i32) {
    %c0_i32 = arith.constant 0 : i32
    %c0_i32_0 = arith.constant 0 : i32
    %c0_i32_1 = arith.constant 0 : i32
    return %c0_i32, %c0_i32_0 : i32, i32
  }
  func.func @transform_7(%arg0: i32) -> (i32, i32) {
    %c0_i32 = arith.constant 0 : i32
    %c0_i32_0 = arith.constant 0 : i32
    %c0_i32_1 = arith.constant 0 : i32
    return %c0_i32, %c0_i32_0 : i32, i32
  }
  func.func @transform_8(%arg0: i32) -> (i32, i32) {
    %c0_i32 = arith.constant 0 : i32
    %c0_i32_0 = arith.constant 0 : i32
    return %arg0, %c0_i32 : i32, i32
  }
}

</mosaic_0001>

<bundles_post_ra>
// kernel: tpu_custom_call.1
= control target key start
LH: loop header
LB: loop body
LE: loop exit
PB: predicated region body
PF: predicated region fallthrough
CT: control target
= control target key end

     0   :  { %13 = vsyncpa [#allocation7], 0  ;;  %s4193_s0 = inlined_call_operand.vmem [shape: bf16[64,4], index: 0, kind: input, shape index: {}]   ;;  %s4194_s1 = inlined_call_operand.vmem [shape: f32[8,128], index: 1, kind: input, shape index: {}]   ;;  %s4195_s2 = inlined_call_operand.vmem [shape: f32[8,128], index: 2, kind: input, shape index: {}]   ;;  %s4196_s3 = inlined_call_operand.vmem [shape: bf16[4,512], index: 3, kind: input, shape index: {}]   ;;  %s4197_s4 = inlined_call_operand.hbm [shape: bf16[128,512], index: 4, kind: input, shape index: {}]   ;;  %s4198_s5 = inlined_call_operand.vmem [shape: f32[1,512], index: 5, kind: input, shape index: {}]   ;;  %s4199_s6 = inlined_call_operand.hbm [shape: bf16[128,128], index: 6, kind: input, shape index: {}]   ;;  %s4200_s7 = inlined_call_operand.vmem [shape: f32[1,128], index: 7, kind: input, shape index: {}]   ;;  %s4201_s8 = inlined_call_operand.hbm [shape: f32[64,128], index: 8, kind: output, shape index: {}]  }
   0x1   :  { %14 = vsyncpa [#allocation10], 0 }
   0x2   :  { %15 = vsyncpa [#allocation8], 0  ;;  %s3503_s27 = smov [#allocation6]   ;;  %s3431_s9 = scalar_lea.hbm %s4197_s4, 4096 }
   0x3   :  { %s29_s28 = sshll.u32 %s3503_s27, 4  ;;  %p3432_p0 = scmp.ne.s32.totalorder %s4197_s4, %s3431_s9  ;;  %s30_s28 = int_to_ptr.vmem [resolvable:$true] %s29_s28 }
   0x4   :  { %p3435_p1 = scmp.lt.u32.totalorder %s3431_s9, %s4197_s4 }
   0x6   :  { %p3437_p2 = pnand %p3435_p1, %p3432_p0 }
   0x8   :  { %3440 = shalt.err (!%p3437_p2)
}
   0x9   :  { %s3441_s14 = scalar_lea.vmem %s30_s28, 4096  ;;  %p3446_p4 = scmp.lt.s32.totalorder %s30_s28, %s30_s28 }
   0xa   :  { %p3442_p3 = scmp.ne.s32.totalorder %s30_s28, %s3441_s14  ;;  %p3447_p5 = scmp.lt.s32.totalorder %s3441_s14, %s3441_s14 }
   0xc   :  { %p3448_p6 = por %p3447_p5, %p3446_p4 }
   0xe   :  { %p3449_p7 = pnand %p3448_p6, %p3442_p3 }
  0x10   :  { %3452 = shalt.err (!%p3449_p7)
}
  0x11   :  { %s3504_s15 = smov 256   ;;  %s3505_s16 = smov 16  }
  0x12   :  { %35 = dma.hbm_to_vmem [thread:$0]  %s4197_s4, 4096, %s30_s28, [#allocation7], %s3504_s15, %s3504_s15, %s3505_s16  }
  0x13   :  { %s3506_s19 = smov [#allocation9]   ;;  %s3453_s23 = scalar_lea.hbm %s4199_s6, 1024 }
  0x14   :  { %s43_s20 = sshll.u32 %s3506_s19, 4  ;;  %p3454_p8 = scmp.ne.s32.totalorder %s4199_s6, %s3453_s23  ;;  %s44_s20 = int_to_ptr.vmem [resolvable:$true] %s43_s20 }
  0x15   :  { %p3457_p9 = scmp.lt.u32.totalorder %s3453_s23, %s4199_s6 }
  0x17   :  { %p3459_p10 = pnand %p3457_p9, %p3454_p8 }
  0x19   :  { %3462 = shalt.err (!%p3459_p10)
}
  0x1a   :  { %s3463_s29 = scalar_lea.vmem %s44_s20, 1024  ;;  %p3468_p12 = scmp.lt.s32.totalorder %s44_s20, %s44_s20 }
  0x1b   :  { %p3464_p11 = scmp.ne.s32.totalorder %s44_s20, %s3463_s29  ;;  %p3469_p13 = scmp.lt.s32.totalorder %s3463_s29, %s3463_s29 }
  0x1d   :  { %p3470_p0 = por %p3469_p13, %p3468_p12 }
  0x1f   :  { %p3471_p1 = pnand %p3470_p0, %p3464_p11 }
  0x21   :  { %3474 = shalt.err (!%p3471_p1)
}
  0x22   :  { %s3507_s4 = smov 64   ;;  %s3508_s28 = smov 4  }
  0x23   :  { %49 = dma.hbm_to_vmem [thread:$0]  %s4199_s6, 1024, %s44_s20, [#allocation10], %s3507_s4, %s3507_s4, %s3508_s28  }
  0x24   :  { %3497 = dma.done.wait [#allocation7], 4096  }
  0x25   :  { %3498 = vsyncadd [#allocation7], 4294963200 }
  0x26   :  { %3499 = dma.done.wait [#allocation10], 1024  }
  0x27   :  { %3500 = vsyncadd [#allocation10], 4294966272  ;;  %v78_v0 = vlaneseq  ;;  %v3509_v1 = vmov 1983009808   ;;  %v4202_v3 = vmov 0   ;;  %v75_v7 = vld [vmem:[%s4196_s3] sm:$0xff] }
  0x28   :  { %v121_v2 = vunpack.c.l.s4 %v3509_v1  ;;  %267 = vmatprep.mubr.bf16.mxu1 %v4202_v3  ;;  %194 = vmatprep.mubr.bf16.mxu0 %v4202_v3  ;;  %v119_v8 = vcombine.high %v75_v7, %v75_v7  ;;  %vm149_vm0 = vcmask 1041408   ;;  %v3591_v15 = vld [vmem:[#allocation6 + $0x4] ss:$16 sps:$4 sm:$0xff]   ;;  %vm136_vm1 = vcmask 31744   ;;  %v3597_v17 = vld [vmem:[#allocation6] ss:$16 sps:$4 sm:$0xff]  }
  0x29   :  { %v3585_v4 = vshrl.u32 %v78_v0, 7  ;;  %v3234_v16 = vld [vmem:[%s4193_s0] sm:$0xff]   ;;  %v3241_v21 = vld [vmem:[%s4193_s0 + $0x8] sm:$0xff]   ;;  %v3248_v26 = vld [vmem:[%s4193_s0 + $0x10] sm:$0xff]  }
  0x2a   :  { %v122_v5 = vunpack.c.0.s8 %v121_v2  ;;  %v3600_v18 = vld [vmem:[#allocation6 + $0x24] ss:$16 sps:$4 sm:$0xff]   ;;  %v3608_v19 = vld [vmem:[#allocation6 + $0x20] ss:$16 sps:$4 sm:$0xff]   ;;  %v3255_v31 = vld [vmem:[%s4193_s0 + $0x18] sm:$0xff]  }
  0x2b   :  { %v3612_v20 = vld [vmem:[#allocation6 + $0x44] ss:$16 sps:$4 sm:$0xff]   ;;  %v3620_v22 = vld [vmem:[#allocation6 + $0x40] ss:$16 sps:$4 sm:$0xff]   ;;  %v3680_v36 = vld [vmem:[#allocation6 + $0xc] ss:$16 sps:$4 sm:$0xff]  }
  0x2c   :  { %v125_v6 = vsub.s32 %v122_v5, %v3585_v4  ;;  %v3623_v23 = vld [vmem:[#allocation6 + $0x64] ss:$16 sps:$4 sm:$0xff]   ;;  %v3631_v24 = vld [vmem:[#allocation6 + $0x60] ss:$16 sps:$4 sm:$0xff]   ;;  %v3686_v37 = vld [vmem:[#allocation6 + $0x8] ss:$16 sps:$4 sm:$0xff]  }
  0x2d   :  { %v3635_v25 = vld [vmem:[#allocation6 + $0x84] ss:$16 sps:$4 sm:$0xff]   ;;  %v3643_v27 = vld [vmem:[#allocation6 + $0x80] ss:$16 sps:$4 sm:$0xff]   ;;  %v3689_v39 = vld [vmem:[#allocation6 + $0x2c] ss:$16 sps:$4 sm:$0xff]  }
  0x2e   :  { %v126_v9 = vrot.slane %v75_v7, %v125_v6  ;;  %v133_v10 = vrot.slane %v119_v8, %v125_v6  ;;  %v3646_v28 = vld [vmem:[#allocation6 + $0xa4] ss:$16 sps:$4 sm:$0xff]   ;;  %v3649_v29 = vld [vmem:[#allocation6 + $0xa0] ss:$16 sps:$4 sm:$0xff]   ;;  %v3695_v40 = vld [vmem:[#allocation6 + $0x28] ss:$16 sps:$4 sm:$0xff]  }
  0x2f   :  { %v3654_v30 = vld [vmem:[#allocation6 + $0xc4] ss:$16 sps:$4 sm:$0xff]   ;;  %v3663_v32 = vld [vmem:[#allocation6 + $0xc0] ss:$16 sps:$4 sm:$0xff]   ;;  %v3699_v41 = vld [vmem:[#allocation6 + $0x4c] ss:$16 sps:$4 sm:$0xff]  }
  0x30   :  { %v134_v11 = vcombine.high %v126_v9, %v126_v9  ;;  %v151_v12 = vsel %vm149_vm0, %v126_v9, 0  ;;  %v135_v13 = vcombine.high %v133_v10, %v133_v10  ;;  %v157_v14 = vsel %vm149_vm0, %v133_v10, 0  ;;  %v3666_v33 = vld [vmem:[#allocation6 + $0xe4] ss:$16 sps:$4 sm:$0xff]   ;;  %v3672_v34 = vld [vmem:[#allocation6 + $0xe0] ss:$16 sps:$4 sm:$0xff]  }
  0x31   :  { %v63_v35 = vld [vmem:[%s4194_s1] sm:$0xff]  ;;  %v3702_v42 = vld [vmem:[#allocation6 + $0x48] ss:$16 sps:$4 sm:$0xff]   ;;  %v3705_v43 = vld [vmem:[#allocation6 + $0x6c] ss:$16 sps:$4 sm:$0xff]   ;;  %v80_v53 = vsub.s32 0, %v3585_v4 }
  0x32   :  { %2911 = vmatprep.subr.msk.bf16.mxu0 %vm149_vm0, %v134_v11  ;;  %2916 = vmatprep.subr.msk.bf16.mxu1 %vm149_vm0, %v135_v13  ;;  %v342_v38 = vpack.c.bf16 %v63_v35, %v63_v35  ;;  %v3708_v44 = vld [vmem:[#allocation6 + $0x68] ss:$16 sps:$4 sm:$0xff]   ;;  %v3711_v45 = vld [vmem:[#allocation6 + $0x8c] ss:$16 sps:$4 sm:$0xff]   ;;  %v84_v54 = vsub.s32 1, %v3585_v4  ;;  %v88_v55 = vsub.s32 2, %v3585_v4 }
  0x33   :  { %163 = vmatpush1.bf16.msra.mxu0 %v151_v12  ;;  %236 = vmatpush1.bf16.msra.mxu1 %v157_v14  ;;  %v3714_v46 = vld [vmem:[#allocation6 + $0x88] ss:$16 sps:$4 sm:$0xff]   ;;  %v3717_v47 = vld [vmem:[#allocation6 + $0xac] ss:$16 sps:$4 sm:$0xff]   ;;  %v92_v56 = vsub.s32 3, %v3585_v4 }
  0x34   :  { %837 = vmatprep.subr.bf16.mxu0 %v3591_v15  ;;  %539 = vmatprep.subr.bf16.mxu1 %v3591_v15  ;;  %v3720_v48 = vld [vmem:[#allocation6 + $0xa8] ss:$16 sps:$4 sm:$0xff]   ;;  %v3723_v49 = vld [vmem:[#allocation6 + $0xcc] ss:$16 sps:$4 sm:$0xff]   ;;  %v76_v57 = vld [vmem:[%s4198_s5] sm:$0xf] }
  0x35   :  { %v3726_v50 = vld [vmem:[#allocation6 + $0xc8] ss:$16 sps:$4 sm:$0xff]   ;;  %v3729_v51 = vld [vmem:[#allocation6 + $0xec] ss:$16 sps:$4 sm:$0xff]   ;;  %v81_v58 = vrot.slane %v76_v57, %v80_v53  ;;  %v3761_v59 = vrot.slane %v76_v57, %v84_v54  ;;  %v3763_v60 = vrot.slane %v76_v57, %v88_v55  ;;  %v3765_v61 = vrot.slane %v76_v57, %v92_v56 }
  0x36   :  { %2912 = vmatmul.mubr.msk.bf16.vlgmr.msra.gmra.mrb[0].mxu0 %vm136_vm1, %v3234_v16  ;;  %2917 = vmatmul.mubr.msk.bf16.vlgmr.msra.gmra.mrb[0].mxu1 %vm136_vm1, %v3234_v16  ;;  %v3732_v52 = vld [vmem:[#allocation6 + $0xe8] ss:$16 sps:$4 sm:$0xff]  }
  0x37   :  { %838 = vmatpush1.bf16.msra.mxu0 %v3597_v17  ;;  %204 = vmatprep.mubr.bf16.mxu0 %v4202_v3 }
  0x38   :  { %839 = vmatprep.subr.bf16.mxu0 %v3600_v18  ;;  %540 = vmatpush1.bf16.msra.mxu1 %v3597_v17 }
  0x39   :  { %277 = vmatprep.mubr.bf16.mxu1 %v4202_v3  ;;  %541 = vmatprep.subr.bf16.mxu1 %v3600_v18 }
  0x3b   :  { %840 = vmatpush1.bf16.msra.mxu0 %v3608_v19 }
  0x3c   :  { %841 = vmatprep.subr.bf16.mxu0 %v3612_v20  ;;  %542 = vmatpush1.bf16.msra.mxu1 %v3608_v19 }
  0x3d   :  { %543 = vmatprep.subr.bf16.mxu1 %v3612_v20 }
  0x3e   :  { %2913 = vmatmul.mubr.msk.bf16.gmra.mrb[4].mxu0 %vm136_vm1, %v3241_v21  ;;  %2918 = vmatmul.mubr.msk.bf16.gmra.mrb[4].mxu1 %vm136_vm1, %v3241_v21 }
  0x3f   :  { %842 = vmatpush1.bf16.msra.mxu0 %v3620_v22  ;;  %214 = vmatprep.mubr.bf16.mxu0 %v4202_v3 }
  0x40   :  { %843 = vmatprep.subr.bf16.mxu0 %v3623_v23  ;;  %544 = vmatpush1.bf16.msra.mxu1 %v3620_v22 }
  0x41   :  { %287 = vmatprep.mubr.bf16.mxu1 %v4202_v3  ;;  %545 = vmatprep.subr.bf16.mxu1 %v3623_v23 }
  0x43   :  { %844 = vmatpush1.bf16.msra.mxu0 %v3631_v24 }
  0x44   :  { %845 = vmatprep.subr.bf16.mxu0 %v3635_v25  ;;  %546 = vmatpush1.bf16.msra.mxu1 %v3631_v24 }
  0x45   :  { %547 = vmatprep.subr.bf16.mxu1 %v3635_v25 }
  0x46   :  { %2914 = vmatmul.mubr.msk.bf16.gmra.mrb[8].mxu0 %vm136_vm1, %v3248_v26  ;;  %2919 = vmatmul.mubr.msk.bf16.gmra.mrb[8].mxu1 %vm136_vm1, %v3248_v26 }
  0x47   :  { %846 = vmatpush1.bf16.msra.mxu0 %v3643_v27  ;;  %224 = vmatprep.mubr.bf16.mxu0 %v4202_v3 }
  0x48   :  { %847 = vmatprep.subr.bf16.mxu0 %v3646_v28  ;;  %548 = vmatpush1.bf16.msra.mxu1 %v3643_v27 }
  0x49   :  { %297 = vmatprep.mubr.bf16.mxu1 %v4202_v3  ;;  %549 = vmatprep.subr.bf16.mxu1 %v3646_v28 }
  0x4b   :  { %848 = vmatpush1.bf16.msra.mxu0 %v3649_v29 }
  0x4c   :  { %849 = vmatprep.subr.bf16.mxu0 %v3654_v30  ;;  %550 = vmatpush1.bf16.msra.mxu1 %v3649_v29 }
  0x4d   :  { %551 = vmatprep.subr.bf16.mxu1 %v3654_v30 }
  0x4e   :  { %2915 = vmatmul.mubr.msk.bf16.gmra.mrb[12].mxu0 %vm136_vm1, %v3255_v31  ;;  %2920 = vmatmul.mubr.msk.bf16.gmra.mrb[12].mxu1 %vm136_vm1, %v3255_v31 }
  0x4f   :  { %850 = vmatpush1.bf16.msra.mxu0 %v3663_v32  ;;  %869 = vmatprep.mubr.bf16.mxu0 %v4202_v3 }
  0x50   :  { %851 = vmatprep.subr.bf16.mxu0 %v3666_v33  ;;  %552 = vmatpush1.bf16.msra.mxu1 %v3663_v32 }
  0x51   :  { %571 = vmatprep.mubr.bf16.mxu1 %v4202_v3  ;;  %553 = vmatprep.subr.bf16.mxu1 %v3666_v33 }
  0x53   :  { %852 = vmatpush1.bf16.msra.mxu0 %v3672_v34 }
  0x54   :  { %1138 = vmatprep.subr.bf16.mxu0 %v3591_v15  ;;  %554 = vmatpush1.bf16.msra.mxu1 %v3672_v34 }
  0x55   :  { %580 = vmatprep.subr.bf16.mxu1 %v3680_v36 }
  0x57   :  { %572 = vmatmul.mubr.bf16.vlgmr.msra.gmra.mrb[16].mxu1 %v342_v38 }
  0x58   :  { %581 = vmatpush1.bf16.msra.mxu1 %v3686_v37  ;;  %612 = vmatprep.mubr.bf16.mxu1 %v4202_v3 }
  0x59   :  { %582 = vmatprep.subr.bf16.mxu1 %v3689_v39 }
  0x5c   :  { %583 = vmatpush1.bf16.msra.mxu1 %v3695_v40 }
  0x5d   :  { %584 = vmatprep.subr.bf16.mxu1 %v3699_v41 }
  0x60   :  { %585 = vmatpush1.bf16.msra.mxu1 %v3702_v42 }
  0x61   :  { %586 = vmatprep.subr.bf16.mxu1 %v3705_v43 }
  0x64   :  { %587 = vmatpush1.bf16.msra.mxu1 %v3708_v44 }
  0x65   :  { %588 = vmatprep.subr.bf16.mxu1 %v3711_v45 }
  0x68   :  { %589 = vmatpush1.bf16.msra.mxu1 %v3714_v46 }
  0x69   :  { %590 = vmatprep.subr.bf16.mxu1 %v3717_v47 }
  0x6c   :  { %591 = vmatpush1.bf16.msra.mxu1 %v3720_v48 }
  0x6d   :  { %592 = vmatprep.subr.bf16.mxu1 %v3723_v49 }
  0x70   :  { %593 = vmatpush1.bf16.msra.mxu1 %v3726_v50 }
  0x71   :  { %594 = vmatprep.subr.bf16.mxu1 %v3729_v51 }
  0x74   :  { %595 = vmatpush1.bf16.msra.mxu1 %v3732_v52 }
  0x75   :  { %878 = vmatprep.subr.bf16.mxu1 %v3680_v36 }
  0x77   :  { %613 = vmatmul.mubr.bf16.vlgmr.msra.gmra.mrb[20].mxu1 %v342_v38 }
  0x78   :  { %879 = vmatpush1.bf16.msra.mxu1 %v3686_v37  ;;  %910 = vmatprep.mubr.bf16.mxu1 %v4202_v3 }
  0x79   :  { %880 = vmatprep.subr.bf16.mxu1 %v3689_v39 }
  0x7c   :  { %881 = vmatpush1.bf16.msra.mxu1 %v3695_v40 }
  0x7d   :  { %882 = vmatprep.subr.bf16.mxu1 %v3699_v41 }
  0x80   :  { %883 = vmatpush1.bf16.msra.mxu1 %v3702_v42 }
  0x81   :  { %884 = vmatprep.subr.bf16.mxu1 %v3705_v43 }
  0x84   :  { %885 = vmatpush1.bf16.msra.mxu1 %v3708_v44 }
  0x85   :  { %886 = vmatprep.subr.bf16.mxu1 %v3711_v45 }
  0x88   :  { %887 = vmatpush1.bf16.msra.mxu1 %v3714_v46 }
  0x89   :  { %888 = vmatprep.subr.bf16.mxu1 %v3717_v47 }
  0x8c   :  { %889 = vmatpush1.bf16.msra.mxu1 %v3720_v48 }
  0x8d   :  { %890 = vmatprep.subr.bf16.mxu1 %v3723_v49 }
  0x90   :  { %891 = vmatpush1.bf16.msra.mxu1 %v3726_v50 }
  0x91   :  { %892 = vmatprep.subr.bf16.mxu1 %v3729_v51 }
  0x94   :  { %893 = vmatpush1.bf16.msra.mxu1 %v3732_v52 }
  0x95   :  { %1179 = vmatprep.subr.bf16.mxu1 %v3680_v36 }
 0x109   :  { %v196_v62 = vpop.f32.mrb[0].mxu0  ;;  %v269_v1 = vpop.f32.mrb[0].mxu1 }
 0x10a   :  { %v3767_v63 = vadd.f32 %v196_v62, %v81_v58  ;;  %v198_v0 = vpop.f32.mrb[1].mxu0  ;;  %v3773_v5 = vadd.f32 %v269_v1, %v3763_v60  ;;  %v271_v6 = vpop.f32.mrb[1].mxu1 }
 0x10b   :  { %v3770_v2 = vadd.f32 %v198_v0, %v3761_v59  ;;  %v200_v4 = vpop.f32.mrb[2].mxu0  ;;  %v3778_v9 = vadd.f32 %v271_v6, %v3765_v61  ;;  %v273_v10 = vpop.f32.mrb[2].mxu1 }
 0x10c   :  { %v3775_v7 = vadd.f32 %v200_v4, %v81_v58  ;;  %v202_v8 = vpop.f32.mrb[3].mxu0  ;;  %v3784_v12 = vadd.f32 %v273_v10, %v3763_v60  ;;  %v275_v13 = vpop.f32.mrb[3].mxu1 }
 0x10d   :  { %v3781_v11 = vadd.f32 %v202_v8, %v3761_v59  ;;  %v3787_v14 = vadd.f32 %v275_v13, %v3765_v61 }
 0x111   :  { %v206_v16 = vpop.f32.mrb[4].mxu0  ;;  %v279_v31 = vpop.f32.mrb[4].mxu1 }
 0x112   :  { %v3789_v21 = vadd.f32 %v206_v16, %v81_v58  ;;  %v208_v26 = vpop.f32.mrb[5].mxu0  ;;  %v3795_v53 = vadd.f32 %v279_v31, %v3763_v60  ;;  %v281_v54 = vpop.f32.mrb[5].mxu1 }
 0x113   :  { %v3792_v35 = vadd.f32 %v208_v26, %v3761_v59  ;;  %v210_v38 = vpop.f32.mrb[6].mxu0  ;;  %v3800_v57 = vadd.f32 %v281_v54, %v3765_v61  ;;  %v283_v62 = vpop.f32.mrb[6].mxu1 }
 0x114   :  { %v3797_v55 = vadd.f32 %v210_v38, %v81_v58  ;;  %v212_v56 = vpop.f32.mrb[7].mxu0  ;;  %v3806_v1 = vadd.f32 %v283_v62, %v3763_v60  ;;  %v285_v4 = vpop.f32.mrb[7].mxu1 }
 0x115   :  { %v3803_v0 = vadd.f32 %v212_v56, %v3761_v59  ;;  %v3809_v6 = vadd.f32 %v285_v4, %v3765_v61 }
 0x117   :  { %4204 = vst [vmem:[#allocation15_spill] sm:$0xff] %v3809_v6 }
 0x119   :  { %v216_v8 = vpop.f32.mrb[8].mxu0  ;;  %v289_v16 = vpop.f32.mrb[8].mxu1 }
 0x11a   :  { %v3811_v10 = vadd.f32 %v216_v8, %v81_v58  ;;  %v218_v13 = vpop.f32.mrb[9].mxu0  ;;  %v3817_v38 = vadd.f32 %v289_v16, %v3763_v60  ;;  %v291_v54 = vpop.f32.mrb[9].mxu1 }
 0x11b   :  { %v3814_v26 = vadd.f32 %v218_v13, %v3761_v59  ;;  %v220_v31 = vpop.f32.mrb[10].mxu0  ;;  %v3822_v3 = vadd.f32 %v291_v54, %v3765_v61  ;;  %v293_v4 = vpop.f32.mrb[10].mxu1 }
 0x11c   :  { %4205 = vst [vmem:[#allocation16_spill] sm:$0xff] %v3811_v10  ;;  %4207 = vst [vmem:[#allocation18_spill] sm:$0xff] %v3817_v38  ;;  %v3819_v56 = vadd.f32 %v220_v31, %v81_v58  ;;  %v222_v62 = vpop.f32.mrb[11].mxu0  ;;  %v3828_v10 = vadd.f32 %v293_v4, %v3763_v60  ;;  %v295_v13 = vpop.f32.mrb[11].mxu1 }
 0x11d   :  { %4206 = vst [vmem:[#allocation17_spill] sm:$0xff] %v3814_v26  ;;  %4209 = vst [vmem:[#allocation20_spill] sm:$0xff] %v3822_v3  ;;  %v3825_v8 = vadd.f32 %v222_v62, %v3761_v59  ;;  %v3831_v26 = vadd.f32 %v295_v13, %v3765_v61 }
 0x11e   :  { %4208 = vst [vmem:[#allocation19_spill] sm:$0xff] %v3819_v56  ;;  %4211 = vst [vmem:[#allocation22_spill] sm:$0xff] %v3828_v10 }
 0x11f   :  { %4210 = vst [vmem:[#allocation21_spill] sm:$0xff] %v3825_v8  ;;  %4212 = vst [vmem:[#allocation23_spill] sm:$0xff] %v3831_v26 }
 0x121   :  { %v226_v16 = vpop.f32.mrb[12].mxu0  ;;  %v299_v56 = vpop.f32.mrb[12].mxu1 }
 0x122   :  { %v3833_v38 = vadd.f32 %v226_v16, %v81_v58  ;;  %v228_v31 = vpop.f32.mrb[13].mxu0  ;;  %v3839_v3 = vadd.f32 %v299_v56, %v3763_v60  ;;  %v301_v62 = vpop.f32.mrb[13].mxu1 }
 0x123   :  { %v3836_v6 = vadd.f32 %v228_v31, %v3761_v59  ;;  %v230_v54 = vpop.f32.mrb[14].mxu0  ;;  %v3844_v10 = vadd.f32 %v301_v62, %v3765_v61  ;;  %v303_v13 = vpop.f32.mrb[14].mxu1 }
 0x124   :  { %4213 = vst [vmem:[#allocation24_spill] sm:$0xff] %v3833_v38  ;;  %4215 = vst [vmem:[#allocation26_spill] sm:$0xff] %v3839_v3  ;;  %v3841_v8 = vadd.f32 %v230_v54, %v81_v58  ;;  %v232_v4 = vpop.f32.mrb[15].mxu0  ;;  %v3850_v38 = vadd.f32 %v303_v13, %v3763_v60  ;;  %v305_v31 = vpop.f32.mrb[15].mxu1 }
 0x125   :  { %4214 = vst [vmem:[#allocation25_spill] sm:$0xff] %v3836_v6  ;;  %4217 = vst [vmem:[#allocation28_spill] sm:$0xff] %v3844_v10  ;;  %v3847_v16 = vadd.f32 %v232_v4, %v3761_v59  ;;  %v3853_v6 = vadd.f32 %v305_v31, %v3765_v61 }
 0x126   :  { %4216 = vst [vmem:[#allocation27_spill] sm:$0xff] %v3841_v8 }
 0x127   :  { %4218 = vst [vmem:[#allocation29_spill] sm:$0xff] %v3847_v16  ;;  %4219 = vst [vmem:[#allocation30_spill] sm:$0xff] %v3853_v6 }
 0x12a   :  { %v573_v56 = vpop.f32.mrb[16].mxu1 }
 0x12b   :  { %v574_v3 = vadd.f32 %v573_v56, %v3767_v63  ;;  %v575_v58 = vpop.f32.mrb[17].mxu1 }
 0x12c   :  { %v576_v54 = vadd.f32 %v575_v58, %v3770_v2  ;;  %v577_v8 = vpop.f32.mrb[18].mxu1 }
 0x12d   :  { %v578_v62 = vpop.f32.mrb[19].mxu1  ;;  %v621_v26 = vmul.f32 0.5, %v574_v3  ;;  %v65_v3 = vld [vmem:[%s4195_s2] sm:$0xff] }
 0x12e   :  { %v625_v10 = vmul.f32 0.5, %v576_v54 }
 0x130   :  { %3351 = vtanh.f32 %v625_v10 }
 0x131   :  { %3353 = vtanh.f32 %v621_v26 }
 0x13a   :  { %v3352_v31 = vpop.eup %3351 }
 0x13b   :  { %v3354_v63 = vpop.eup %3353  ;;  %v627_v56 = vmul.f32 0.5, %v3352_v31 }
 0x13c   :  { %v623_v2 = vmul.f32 0.5, %v3354_v63 }
 0x13d   :  { %v628_v8 = vadd.f32 0.5, %v627_v56 }
 0x13e   :  { %v624_v10 = vadd.f32 0.5, %v623_v2 }
 0x14a   :  { %v614_v59 = vpop.f32.mrb[20].mxu1 }
 0x14b   :  { %v615_v60 = vadd.f32 %v614_v59, %v3773_v5  ;;  %v616_v4 = vpop.f32.mrb[21].mxu1  ;;  %v634_v5 = vmul.f32 %v628_v8, %v65_v3 }
 0x14c   :  { %v617_v13 = vadd.f32 %v616_v4, %v3778_v9  ;;  %v618_v61 = vpop.f32.mrb[22].mxu1 }
 0x14d   :  { %3355 = vtanh.f32 %v615_v60  ;;  %v619_v6 = vpop.f32.mrb[23].mxu1 }
 0x14e   :  { %v630_v16 = vmul.f32 0.5, %v617_v13 }
 0x150   :  { %3357 = vtanh.f32 %v630_v16  ;;  %v4220_v16 = vmov 0  }
 0x157   :  { %v3356_v26 = vpop.eup %3355 }
 0x158   :  { %v635_v58 = vmul.f32 %v3356_v26, %v624_v10 }
 0x15a   :  { %v3862_v54 = vadd.f32 %v635_v58, %v634_v5  ;;  %v3358_v9 = vpop.eup %3357 }
 0x15b   :  { %v632_v6 = vmul.f32 0.5, %v3358_v9 }
 0x15c   :  { %3359 = vtanh.f32 %v3862_v54 }
 0x15d   :  { %v633_v62 = vadd.f32 0.5, %v632_v6 }
 0x166   :  { %v3360_v59 = vpop.eup %3359 }
 0x167   :  { %v638_v60 = vmul.f32 %v3360_v59, %v633_v62 }
 0x169   :  { %v639_v4 = vpack.c.bf16 %v638_v60, %v638_v60 }
 0x16b   :  { %640 = vst [vmem:[#allocation5] sm:$0xf] %v639_v4  ;;  %870 = vmatmul.mubr.bf16.vlgmr.msra.gmra.mrb[16].mxu0 %v639_v4  ;;  %911 = vmatmul.mubr.bf16.vlgmr.msra.gmra.mrb[24].mxu1 %v639_v4 }
 0x16c   :  { %1139 = vmatpush1.bf16.msra.mxu0 %v3597_v17  ;;  %1180 = vmatpush1.bf16.msra.mxu1 %v3686_v37 }
 0x16d   :  { %1140 = vmatprep.subr.bf16.mxu0 %v3600_v18  ;;  %1181 = vmatprep.subr.bf16.mxu1 %v3689_v39 }
 0x16e   :  { %1170 = vmatprep.mubr.bf16.mxu0 %v4220_v16  ;;  %1211 = vmatprep.mubr.bf16.mxu1 %v4220_v16 }
 0x170   :  { %1141 = vmatpush1.bf16.msra.mxu0 %v3608_v19  ;;  %1182 = vmatpush1.bf16.msra.mxu1 %v3695_v40 }
 0x171   :  { %1142 = vmatprep.subr.bf16.mxu0 %v3612_v20  ;;  %1183 = vmatprep.subr.bf16.mxu1 %v3699_v41 }
 0x174   :  { %1143 = vmatpush1.bf16.msra.mxu0 %v3620_v22  ;;  %1184 = vmatpush1.bf16.msra.mxu1 %v3702_v42 }
 0x175   :  { %1144 = vmatprep.subr.bf16.mxu0 %v3623_v23  ;;  %1185 = vmatprep.subr.bf16.mxu1 %v3705_v43 }
 0x178   :  { %1145 = vmatpush1.bf16.msra.mxu0 %v3631_v24  ;;  %1186 = vmatpush1.bf16.msra.mxu1 %v3708_v44 }
 0x179   :  { %1146 = vmatprep.subr.bf16.mxu0 %v3635_v25  ;;  %1187 = vmatprep.subr.bf16.mxu1 %v3711_v45 }
 0x17c   :  { %1147 = vmatpush1.bf16.msra.mxu0 %v3643_v27  ;;  %1188 = vmatpush1.bf16.msra.mxu1 %v3714_v46 }
 0x17d   :  { %1148 = vmatprep.subr.bf16.mxu0 %v3646_v28  ;;  %1189 = vmatprep.subr.bf16.mxu1 %v3717_v47 }
 0x180   :  { %1149 = vmatpush1.bf16.msra.mxu0 %v3649_v29  ;;  %1190 = vmatpush1.bf16.msra.mxu1 %v3720_v48 }
 0x181   :  { %1150 = vmatprep.subr.bf16.mxu0 %v3654_v30  ;;  %1191 = vmatprep.subr.bf16.mxu1 %v3723_v49 }
 0x184   :  { %1151 = vmatpush1.bf16.msra.mxu0 %v3663_v32  ;;  %1192 = vmatpush1.bf16.msra.mxu1 %v3726_v50 }
 0x185   :  { %1152 = vmatprep.subr.bf16.mxu0 %v3666_v33  ;;  %1193 = vmatprep.subr.bf16.mxu1 %v3729_v51 }
 0x188   :  { %1153 = vmatpush1.bf16.msra.mxu0 %v3672_v34  ;;  %1194 = vmatpush1.bf16.msra.mxu1 %v3732_v52 }
 0x189   :  { %1436 = vmatprep.subr.bf16.mxu0 %v3591_v15  ;;  %1477 = vmatprep.subr.bf16.mxu1 %v3680_v36 }
 0x23e   :  { %v871_v28 = vpop.f32.mrb[16].mxu0  ;;  %v912_v29 = vpop.f32.mrb[24].mxu1 }
 0x23f   :  { %v872_v30 = vadd.f32 %v871_v28, %v3775_v7  ;;  %v913_v32 = vadd.f32 %v912_v29, %v3784_v12  ;;  %v873_v13 = vpop.f32.mrb[17].mxu0  ;;  %v914_v61 = vpop.f32.mrb[25].mxu1 }
 0x240   :  { %v874_v33 = vadd.f32 %v873_v13, %v3781_v11  ;;  %v915_v31 = vadd.f32 %v914_v61, %v3787_v14  ;;  %v875_v63 = vpop.f32.mrb[18].mxu0  ;;  %v916_v34 = vpop.f32.mrb[26].mxu1 }
 0x241   :  { %v919_v56 = vmul.f32 0.5, %v872_v30  ;;  %v876_v2 = vpop.f32.mrb[19].mxu0  ;;  %v917_v8 = vpop.f32.mrb[27].mxu1 }
 0x242   :  { %v923_v15 = vmul.f32 0.5, %v874_v33  ;;  %v928_v36 = vmul.f32 0.5, %v915_v31  ;;  %v3963_v2 = vld [vmem:[#allocation6 + $0xc] ss:$16 sps:$4 sm:$0xff]   ;;  %v3965_v8 = vld [vmem:[#allocation6] ss:$16 sps:$4 sm:$0xff]  }
 0x243   :  { %3361 = vtanh.f32 %v919_v56  ;;  %v3961_v56 = vld [vmem:[#allocation6 + $0x4] ss:$16 sps:$4 sm:$0xff]  }
 0x244   :  { %3363 = vtanh.f32 %v923_v15  ;;  %v3967_v15 = vld [vmem:[#allocation6 + $0x8] ss:$16 sps:$4 sm:$0xff]  }
 0x245   :  { %3365 = vtanh.f32 %v913_v32 }
 0x246   :  { %3367 = vtanh.f32 %v928_v36  ;;  %v3973_v36 = vld [vmem:[#allocation6 + $0x24] ss:$16 sps:$4 sm:$0xff]  }
 0x24d   :  { %v3362_v3 = vpop.eup %3361 }
 0x24e   :  { %v3364_v7 = vpop.eup %3363  ;;  %v921_v10 = vmul.f32 0.5, %v3362_v3  ;;  %v3975_v3 = vld [vmem:[#allocation6 + $0x2c] ss:$16 sps:$4 sm:$0xff]  }
 0x24f   :  { %v925_v12 = vmul.f32 0.5, %v3364_v7  ;;  %v3366_v5 = vpop.eup %3365  ;;  %v3977_v7 = vld [vmem:[#allocation6 + $0x20] ss:$16 sps:$4 sm:$0xff]  }
 0x250   :  { %v922_v26 = vadd.f32 0.5, %v921_v10  ;;  %v3368_v6 = vpop.eup %3367  ;;  %v3979_v10 = vld [vmem:[#allocation6 + $0x28] ss:$16 sps:$4 sm:$0xff]  }
 0x251   :  { %v926_v11 = vadd.f32 0.5, %v925_v12  ;;  %v930_v62 = vmul.f32 0.5, %v3368_v6  ;;  %v3985_v12 = vld [vmem:[#allocation6 + $0x44] ss:$16 sps:$4 sm:$0xff]   ;;  %v4003_v6 = vld [vmem:[#allocation6 + $0x68] ss:$16 sps:$4 sm:$0xff]  }
 0x252   :  { %v933_v58 = vmul.f32 %v3366_v5, %v922_v26  ;;  %v3987_v26 = vld [vmem:[#allocation6 + $0x4c] ss:$16 sps:$4 sm:$0xff]   ;;  %v3989_v5 = vld [vmem:[#allocation6 + $0x40] ss:$16 sps:$4 sm:$0xff]  }
 0x253   :  { %v932_v14 = vmul.f32 %v926_v11, %v3862_v54  ;;  %v931_v59 = vadd.f32 0.5, %v930_v62  ;;  %v3991_v11 = vld [vmem:[#allocation6 + $0x48] ss:$16 sps:$4 sm:$0xff]   ;;  %v4009_v62 = vld [vmem:[#allocation6 + $0x84] ss:$16 sps:$4 sm:$0xff]  }
 0x255   :  { %v3904_v9 = vadd.f32 %v933_v58, %v932_v14  ;;  %v3997_v58 = vld [vmem:[#allocation6 + $0x64] ss:$16 sps:$4 sm:$0xff]   ;;  %v3999_v14 = vld [vmem:[#allocation6 + $0x6c] ss:$16 sps:$4 sm:$0xff]  }
 0x257   :  { %3369 = vtanh.f32 %v3904_v9 }
 0x261   :  { %v3370_v60 = vpop.eup %3369 }
 0x262   :  { %v936_v4 = vmul.f32 %v3370_v60, %v931_v59  ;;  %v4011_v59 = vld [vmem:[#allocation6 + $0x8c] ss:$16 sps:$4 sm:$0xff]   ;;  %v4013_v60 = vld [vmem:[#allocation6 + $0x80] ss:$16 sps:$4 sm:$0xff]  }
 0x264   :  { %v937_v28 = vpack.c.bf16 %v936_v4, %v936_v4  ;;  %v4015_v4 = vld [vmem:[#allocation6 + $0x88] ss:$16 sps:$4 sm:$0xff]  }
 0x266   :  { %v939_v29 = vrot.slane %v937_v28, 4  ;;  %1171 = vmatmul.mubr.bf16.vlgmr.msra.gmra.mrb[20].mxu0 %v937_v28  ;;  %1212 = vmatmul.mubr.bf16.vlgmr.msra.gmra.mrb[28].mxu1 %v937_v28  ;;  %v4022_v28 = vld [vmem:[#allocation6 + $0xac] ss:$16 sps:$4 sm:$0xff]  }
 0x267   :  { %1437 = vmatpush1.bf16.msra.mxu0 %v3597_v17  ;;  %1478 = vmatpush1.bf16.msra.mxu1 %v3686_v37  ;;  %v3933_v17 = vld [vmem:[#allocation6 + $0xa4] ss:$16 sps:$4 sm:$0xff]  }
 0x268   :  { %941 = vst [vmem:[#allocation5] sm:$0xf0] %v939_v29  ;;  %1438 = vmatprep.subr.bf16.mxu0 %v3600_v18  ;;  %1479 = vmatprep.subr.bf16.mxu1 %v3689_v39  ;;  %v3935_v18 = vld [vmem:[#allocation6 + $0xa0] ss:$16 sps:$4 sm:$0xff]   ;;  %v4024_v29 = vld [vmem:[#allocation6 + $0xa8] ss:$16 sps:$4 sm:$0xff]  }
 0x269   :  { %1468 = vmatprep.mubr.bf16.mxu0 %v4220_v16  ;;  %1509 = vmatprep.mubr.bf16.mxu1 %v4220_v16 }
 0x26b   :  { %1439 = vmatpush1.bf16.msra.mxu0 %v3608_v19  ;;  %1480 = vmatpush1.bf16.msra.mxu1 %v3695_v40  ;;  %v3939_v19 = vld [vmem:[#allocation6 + $0xc4] ss:$16 sps:$4 sm:$0xff]  }
 0x26c   :  { %1440 = vmatprep.subr.bf16.mxu0 %v3612_v20  ;;  %1481 = vmatprep.subr.bf16.mxu1 %v3699_v41  ;;  %v3941_v20 = vld [vmem:[#allocation6 + $0xc0] ss:$16 sps:$4 sm:$0xff]  }
 0x26f   :  { %1441 = vmatpush1.bf16.msra.mxu0 %v3620_v22  ;;  %1482 = vmatpush1.bf16.msra.mxu1 %v3702_v42  ;;  %v3945_v22 = vld [vmem:[#allocation6 + $0xe4] ss:$16 sps:$4 sm:$0xff]  }
 0x270   :  { %1442 = vmatprep.subr.bf16.mxu0 %v3623_v23  ;;  %1483 = vmatprep.subr.bf16.mxu1 %v3705_v43  ;;  %v3947_v23 = vld [vmem:[#allocation6 + $0xe0] ss:$16 sps:$4 sm:$0xff]  }
 0x273   :  { %1443 = vmatpush1.bf16.msra.mxu0 %v3631_v24  ;;  %1484 = vmatpush1.bf16.msra.mxu1 %v3708_v44 }
 0x274   :  { %1444 = vmatprep.subr.bf16.mxu0 %v3635_v25  ;;  %1485 = vmatprep.subr.bf16.mxu1 %v3711_v45 }
 0x277   :  { %1445 = vmatpush1.bf16.msra.mxu0 %v3643_v27  ;;  %1486 = vmatpush1.bf16.msra.mxu1 %v3714_v46 }
 0x278   :  { %1487 = vmatprep.subr.bf16.mxu1 %v3717_v47  ;;  %1446 = vmatprep.subr.bf16.mxu0 %v3933_v17 }
 0x27b   :  { %1488 = vmatpush1.bf16.msra.mxu1 %v3720_v48  ;;  %1447 = vmatpush1.bf16.msra.mxu0 %v3935_v18 }
 0x27c   :  { %1489 = vmatprep.subr.bf16.mxu1 %v3723_v49  ;;  %1448 = vmatprep.subr.bf16.mxu0 %v3939_v19 }
 0x27f   :  { %1490 = vmatpush1.bf16.msra.mxu1 %v3726_v50  ;;  %1449 = vmatpush1.bf16.msra.mxu0 %v3941_v20 }
 0x280   :  { %1491 = vmatprep.subr.bf16.mxu1 %v3729_v51  ;;  %1450 = vmatprep.subr.bf16.mxu0 %v3945_v22 }
 0x283   :  { %1492 = vmatpush1.bf16.msra.mxu1 %v3732_v52  ;;  %1451 = vmatpush1.bf16.msra.mxu0 %v3947_v23 }
 0x284   :  { %1737 = vmatprep.subr.bf16.mxu0 %v3961_v56  ;;  %1778 = vmatprep.subr.bf16.mxu1 %v3963_v2 }
 0x339   :  { %v1172_v24 = vpop.f32.mrb[20].mxu0  ;;  %v1213_v25 = vpop.f32.mrb[28].mxu1 }
 0x33a   :  { %v1173_v27 = vadd.f32 %v1172_v24, %v3789_v21  ;;  %v1214_v37 = vadd.f32 %v1213_v25, %v3795_v53  ;;  %v1174_v39 = vpop.f32.mrb[21].mxu0  ;;  %v1215_v40 = vpop.f32.mrb[29].mxu1  ;;  %v4030_v24 = vld [vmem:[#allocation6 + $0xcc] ss:$16 sps:$4 sm:$0xff]   ;;  %v4032_v25 = vld [vmem:[#allocation6 + $0xc8] ss:$16 sps:$4 sm:$0xff]  }
 0x33b   :  { %v1175_v41 = vadd.f32 %v1174_v39, %v3792_v35  ;;  %v1216_v42 = vadd.f32 %v1215_v40, %v3800_v57  ;;  %v1176_v43 = vpop.f32.mrb[22].mxu0  ;;  %v1217_v44 = vpop.f32.mrb[30].mxu1 }
 0x33c   :  { %v1220_v45 = vmul.f32 0.5, %v1173_v27  ;;  %v1177_v46 = vpop.f32.mrb[23].mxu0  ;;  %v1218_v47 = vpop.f32.mrb[31].mxu1  ;;  %v4038_v27 = vld [vmem:[#allocation6 + $0xec] ss:$16 sps:$4 sm:$0xff]  }
 0x33d   :  { %v1224_v48 = vmul.f32 0.5, %v1175_v41  ;;  %v1229_v49 = vmul.f32 0.5, %v1216_v42  ;;  %v4221_v46 = vld [vmem:[#allocation15_spill] sm:$0xff] }
 0x33e   :  { %3371 = vtanh.f32 %v1220_v45 }
 0x33f   :  { %3373 = vtanh.f32 %v1224_v48 }
 0x340   :  { %3375 = vtanh.f32 %v1214_v37  ;;  %v4040_v37 = vld [vmem:[#allocation6 + $0xe8] ss:$16 sps:$4 sm:$0xff]  }
 0x341   :  { %3377 = vtanh.f32 %v1229_v49 }
 0x348   :  { %v3372_v50 = vpop.eup %3371 }
 0x349   :  { %v3374_v51 = vpop.eup %3373  ;;  %v1222_v52 = vmul.f32 0.5, %v3372_v50 }
 0x34a   :  { %v1226_v21 = vmul.f32 0.5, %v3374_v51  ;;  %v3376_v54 = vpop.eup %3375 }
 0x34b   :  { %v1223_v53 = vadd.f32 0.5, %v1222_v52  ;;  %v3378_v13 = vpop.eup %3377 }
 0x34c   :  { %v1227_v35 = vadd.f32 0.5, %v1226_v21  ;;  %v1231_v61 = vmul.f32 0.5, %v3378_v13 }
 0x34d   :  { %v1234_v30 = vmul.f32 %v3376_v54, %v1223_v53 }
 0x34e   :  { %v1233_v57 = vmul.f32 %v1227_v35, %v3904_v9  ;;  %v1232_v33 = vadd.f32 0.5, %v1231_v61  ;;  %v4001_v9 = vld [vmem:[#allocation6 + $0x60] ss:$16 sps:$4 sm:$0xff]  }
 0x350   :  { %v3956_v32 = vadd.f32 %v1234_v30, %v1233_v57 }
 0x352   :  { %3379 = vtanh.f32 %v3956_v32 }
 0x35c   :  { %v3380_v31 = vpop.eup %3379 }
 0x35d   :  { %v1237_v63 = vmul.f32 %v3380_v31, %v1232_v33 }
 0x35f   :  { %v1238_v34 = vpack.c.bf16 %v1237_v63, %v1237_v63 }
 0x361   :  { %1239 = vst [vmem:[#allocation5 + $0x8] sm:$0xf] %v1238_v34  ;;  %1469 = vmatmul.mubr.bf16.vlgmr.msra.gmra.mrb[24].mxu0 %v1238_v34  ;;  %1510 = vmatmul.mubr.bf16.vlgmr.msra.gmra.mrb[32].mxu1 %v1238_v34 }
 0x362   :  { %1769 = vmatprep.mubr.bf16.mxu0 %v4220_v16  ;;  %1810 = vmatprep.mubr.bf16.mxu1 %v4220_v16 }
 0x363   :  { %1738 = vmatpush1.bf16.msra.mxu0 %v3965_v8  ;;  %1779 = vmatpush1.bf16.msra.mxu1 %v3967_v15 }
 0x364   :  { %1739 = vmatprep.subr.bf16.mxu0 %v3973_v36  ;;  %1780 = vmatprep.subr.bf16.mxu1 %v3975_v3 }
 0x367   :  { %1740 = vmatpush1.bf16.msra.mxu0 %v3977_v7  ;;  %1781 = vmatpush1.bf16.msra.mxu1 %v3979_v10 }
 0x368   :  { %1741 = vmatprep.subr.bf16.mxu0 %v3985_v12  ;;  %1782 = vmatprep.subr.bf16.mxu1 %v3987_v26 }
 0x36b   :  { %1742 = vmatpush1.bf16.msra.mxu0 %v3989_v5  ;;  %1783 = vmatpush1.bf16.msra.mxu1 %v3991_v11 }
 0x36c   :  { %1743 = vmatprep.subr.bf16.mxu0 %v3997_v58  ;;  %1784 = vmatprep.subr.bf16.mxu1 %v3999_v14 }
 0x36f   :  { %1744 = vmatpush1.bf16.msra.mxu0 %v4001_v9  ;;  %1785 = vmatpush1.bf16.msra.mxu1 %v4003_v6 }
 0x370   :  { %1745 = vmatprep.subr.bf16.mxu0 %v4009_v62  ;;  %1786 = vmatprep.subr.bf16.mxu1 %v4011_v59 }
 0x373   :  { %1746 = vmatpush1.bf16.msra.mxu0 %v4013_v60  ;;  %1787 = vmatpush1.bf16.msra.mxu1 %v4015_v4 }
 0x374   :  { %1747 = vmatprep.subr.bf16.mxu0 %v3933_v17  ;;  %1788 = vmatprep.subr.bf16.mxu1 %v4022_v28 }
 0x377   :  { %1748 = vmatpush1.bf16.msra.mxu0 %v3935_v18  ;;  %1789 = vmatpush1.bf16.msra.mxu1 %v4024_v29 }
 0x378   :  { %1749 = vmatprep.subr.bf16.mxu0 %v3939_v19  ;;  %1790 = vmatprep.subr.bf16.mxu1 %v4030_v24 }
 0x37b   :  { %1750 = vmatpush1.bf16.msra.mxu0 %v3941_v20  ;;  %1791 = vmatpush1.bf16.msra.mxu1 %v4032_v25 }
 0x37c   :  { %1751 = vmatprep.subr.bf16.mxu0 %v3945_v22  ;;  %1792 = vmatprep.subr.bf16.mxu1 %v4038_v27 }
 0x37f   :  { %1752 = vmatpush1.bf16.msra.mxu0 %v3947_v23  ;;  %1793 = vmatpush1.bf16.msra.mxu1 %v4040_v37 }
 0x380   :  { %2035 = vmatprep.subr.bf16.mxu0 %v3961_v56  ;;  %2076 = vmatprep.subr.bf16.mxu1 %v3963_v2 }
 0x434   :  { %v1470_v39 = vpop.f32.mrb[24].mxu0  ;;  %v1511_v40 = vpop.f32.mrb[32].mxu1 }
 0x435   :  { %v1471_v41 = vadd.f32 %v1470_v39, %v3797_v55  ;;  %v1512_v42 = vadd.f32 %v1511_v40, %v3806_v1  ;;  %v1472_v43 = vpop.f32.mrb[25].mxu0  ;;  %v1513_v44 = vpop.f32.mrb[33].mxu1 }
 0x436   :  { %v1473_v45 = vadd.f32 %v1472_v43, %v3803_v0  ;;  %v1514_v47 = vadd.f32 %v1513_v44, %v4221_v46  ;;  %v1474_v48 = vpop.f32.mrb[26].mxu0  ;;  %v1515_v49 = vpop.f32.mrb[34].mxu1  ;;  %v4222_v44 = vld [vmem:[#allocation16_spill] sm:$0xff]  ;;  %v4223_v46 = vld [vmem:[#allocation18_spill] sm:$0xff] }
 0x437   :  { %v1518_v50 = vmul.f32 0.5, %v1471_v41  ;;  %v1475_v51 = vpop.f32.mrb[27].mxu0  ;;  %v1516_v52 = vpop.f32.mrb[35].mxu1 }
 0x438   :  { %v1522_v21 = vmul.f32 0.5, %v1473_v45  ;;  %v1527_v53 = vmul.f32 0.5, %v1514_v47  ;;  %v4225_v52 = vld [vmem:[#allocation20_spill] sm:$0xff] }
 0x439   :  { %3381 = vtanh.f32 %v1518_v50  ;;  %v4224_v50 = vld [vmem:[#allocation17_spill] sm:$0xff] }
 0x43a   :  { %3383 = vtanh.f32 %v1522_v21 }
 0x43b   :  { %3385 = vtanh.f32 %v1512_v42 }
 0x43c   :  { %3387 = vtanh.f32 %v1527_v53 }
 0x443   :  { %v3382_v54 = vpop.eup %3381 }
 0x444   :  { %v3384_v55 = vpop.eup %3383  ;;  %v1520_v35 = vmul.f32 0.5, %v3382_v54 }
 0x445   :  { %v1524_v1 = vmul.f32 0.5, %v3384_v55  ;;  %v3386_v57 = vpop.eup %3385 }
 0x446   :  { %v1521_v30 = vadd.f32 0.5, %v1520_v35  ;;  %v3388_v31 = vpop.eup %3387 }
 0x447   :  { %v1525_v0 = vadd.f32 0.5, %v1524_v1  ;;  %v1529_v63 = vmul.f32 0.5, %v3388_v31 }
 0x448   :  { %v1532_v13 = vmul.f32 %v3386_v57, %v1521_v30 }
 0x449   :  { %v1531_v61 = vmul.f32 %v1525_v0, %v3956_v32  ;;  %v1530_v34 = vadd.f32 0.5, %v1529_v63 }
 0x44b   :  { %v4052_v33 = vadd.f32 %v1532_v13, %v1531_v61 }
 0x44d   :  { %3389 = vtanh.f32 %v4052_v33 }
 0x457   :  { %v3390_v39 = vpop.eup %3389 }
 0x458   :  { %v1535_v40 = vmul.f32 %v3390_v39, %v1530_v34 }
 0x45a   :  { %v1536_v41 = vpack.c.bf16 %v1535_v40, %v1535_v40 }
 0x45c   :  { %v1538_v42 = vrot.slane %v1536_v41, 4  ;;  %1770 = vmatmul.mubr.bf16.vlgmr.msra.gmra.mrb[28].mxu0 %v1536_v41  ;;  %1811 = vmatmul.mubr.bf16.vlgmr.msra.gmra.mrb[36].mxu1 %v1536_v41 }
 0x45d   :  { %2036 = vmatpush1.bf16.msra.mxu0 %v3965_v8  ;;  %2077 = vmatpush1.bf16.msra.mxu1 %v3967_v15 }
 0x45e   :  { %1540 = vst [vmem:[#allocation5 + $0x8] sm:$0xf0] %v1538_v42  ;;  %2037 = vmatprep.subr.bf16.mxu0 %v3973_v36  ;;  %2078 = vmatprep.subr.bf16.mxu1 %v3975_v3 }
 0x45f   :  { %2067 = vmatprep.mubr.bf16.mxu0 %v4220_v16  ;;  %2108 = vmatprep.mubr.bf16.mxu1 %v4220_v16 }
 0x461   :  { %2038 = vmatpush1.bf16.msra.mxu0 %v3977_v7  ;;  %2079 = vmatpush1.bf16.msra.mxu1 %v3979_v10 }
 0x462   :  { %2039 = vmatprep.subr.bf16.mxu0 %v3985_v12  ;;  %2080 = vmatprep.subr.bf16.mxu1 %v3987_v26 }
 0x465   :  { %2040 = vmatpush1.bf16.msra.mxu0 %v3989_v5  ;;  %2081 = vmatpush1.bf16.msra.mxu1 %v3991_v11 }
 0x466   :  { %2041 = vmatprep.subr.bf16.mxu0 %v3997_v58  ;;  %2082 = vmatprep.subr.bf16.mxu1 %v3999_v14 }
 0x469   :  { %2042 = vmatpush1.bf16.msra.mxu0 %v4001_v9  ;;  %2083 = vmatpush1.bf16.msra.mxu1 %v4003_v6 }
 0x46a   :  { %2043 = vmatprep.subr.bf16.mxu0 %v4009_v62  ;;  %2084 = vmatprep.subr.bf16.mxu1 %v4011_v59 }
 0x46d   :  { %2044 = vmatpush1.bf16.msra.mxu0 %v4013_v60  ;;  %2085 = vmatpush1.bf16.msra.mxu1 %v4015_v4 }
 0x46e   :  { %2045 = vmatprep.subr.bf16.mxu0 %v3933_v17  ;;  %2086 = vmatprep.subr.bf16.mxu1 %v4022_v28 }
 0x471   :  { %2046 = vmatpush1.bf16.msra.mxu0 %v3935_v18  ;;  %2087 = vmatpush1.bf16.msra.mxu1 %v4024_v29 }
 0x472   :  { %2047 = vmatprep.subr.bf16.mxu0 %v3939_v19  ;;  %2088 = vmatprep.subr.bf16.mxu1 %v4030_v24 }
 0x475   :  { %2048 = vmatpush1.bf16.msra.mxu0 %v3941_v20  ;;  %2089 = vmatpush1.bf16.msra.mxu1 %v4032_v25 }
 0x476   :  { %2049 = vmatprep.subr.bf16.mxu0 %v3945_v22  ;;  %2090 = vmatprep.subr.bf16.mxu1 %v4038_v27 }
 0x479   :  { %2050 = vmatpush1.bf16.msra.mxu0 %v3947_v23  ;;  %2091 = vmatpush1.bf16.msra.mxu1 %v4040_v37 }
 0x47a   :  { %2336 = vmatprep.subr.bf16.mxu0 %v3961_v56  ;;  %2377 = vmatprep.subr.bf16.mxu1 %v3963_v2 }
 0x52f   :  { %v1771_v32 = vpop.f32.mrb[28].mxu0  ;;  %v1812_v43 = vpop.f32.mrb[36].mxu1 }
 0x530   :  { %v1772_v45 = vadd.f32 %v1771_v32, %v4222_v44  ;;  %v1813_v47 = vadd.f32 %v1812_v43, %v4223_v46  ;;  %v1773_v48 = vpop.f32.mrb[29].mxu0  ;;  %v1814_v49 = vpop.f32.mrb[37].mxu1 }
 0x531   :  { %v1774_v51 = vadd.f32 %v1773_v48, %v4224_v50  ;;  %v1815_v21 = vadd.f32 %v1814_v49, %v4225_v52  ;;  %v1775_v53 = vpop.f32.mrb[30].mxu0  ;;  %v1816_v54 = vpop.f32.mrb[38].mxu1  ;;  %v4227_v48 = vld [vmem:[#allocation22_spill] sm:$0xff]  ;;  %v4229_v52 = vld [vmem:[#allocation23_spill] sm:$0xff] }
 0x532   :  { %v1819_v55 = vmul.f32 0.5, %v1772_v45  ;;  %v1776_v35 = vpop.f32.mrb[31].mxu0  ;;  %v1817_v1 = vpop.f32.mrb[39].mxu1 }
 0x533   :  { %v1823_v30 = vmul.f32 0.5, %v1774_v51  ;;  %v1828_v57 = vmul.f32 0.5, %v1815_v21  ;;  %v4228_v51 = vld [vmem:[#allocation21_spill] sm:$0xff] }
 0x534   :  { %3391 = vtanh.f32 %v1819_v55 }
 0x535   :  { %3393 = vtanh.f32 %v1823_v30 }
 0x536   :  { %3395 = vtanh.f32 %v1813_v47 }
 0x537   :  { %3397 = vtanh.f32 %v1828_v57 }
 0x53e   :  { %v3392_v0 = vpop.eup %3391 }
 0x53f   :  { %v3394_v13 = vpop.eup %3393  ;;  %v1821_v61 = vmul.f32 0.5, %v3392_v0 }
 0x540   :  { %v1825_v31 = vmul.f32 0.5, %v3394_v13  ;;  %v3396_v34 = vpop.eup %3395 }
 0x541   :  { %v1822_v63 = vadd.f32 0.5, %v1821_v61  ;;  %v3398_v32 = vpop.eup %3397 }
 0x542   :  { %v1826_v39 = vadd.f32 0.5, %v1825_v31  ;;  %v1830_v43 = vmul.f32 0.5, %v3398_v32 }
 0x543   :  { %v1833_v40 = vmul.f32 %v3396_v34, %v1822_v63 }
 0x544   :  { %v1832_v41 = vmul.f32 %v1826_v39, %v4052_v33  ;;  %v1831_v44 = vadd.f32 0.5, %v1830_v43 }
 0x546   :  { %v4094_v42 = vadd.f32 %v1833_v40, %v1832_v41 }
 0x548   :  { %3399 = vtanh.f32 %v4094_v42 }
 0x552   :  { %v3400_v45 = vpop.eup %3399 }
 0x553   :  { %v1836_v46 = vmul.f32 %v3400_v45, %v1831_v44 }
 0x555   :  { %v1837_v47 = vpack.c.bf16 %v1836_v46, %v1836_v46 }
 0x557   :  { %1838 = vst [vmem:[#allocation5 + $0x10] sm:$0xf] %v1837_v47  ;;  %2068 = vmatmul.mubr.bf16.vlgmr.msra.gmra.mrb[32].mxu0 %v1837_v47  ;;  %2109 = vmatmul.mubr.bf16.vlgmr.msra.gmra.mrb[40].mxu1 %v1837_v47 }
 0x558   :  { %2337 = vmatpush1.bf16.msra.mxu0 %v3965_v8  ;;  %2378 = vmatpush1.bf16.msra.mxu1 %v3967_v15 }
 0x559   :  { %2338 = vmatprep.subr.bf16.mxu0 %v3973_v36  ;;  %2379 = vmatprep.subr.bf16.mxu1 %v3975_v3 }
 0x55a   :  { %2368 = vmatprep.mubr.bf16.mxu0 %v4220_v16  ;;  %2409 = vmatprep.mubr.bf16.mxu1 %v4220_v16 }
 0x55c   :  { %2339 = vmatpush1.bf16.msra.mxu0 %v3977_v7  ;;  %2380 = vmatpush1.bf16.msra.mxu1 %v3979_v10 }
 0x55d   :  { %2340 = vmatprep.subr.bf16.mxu0 %v3985_v12  ;;  %2381 = vmatprep.subr.bf16.mxu1 %v3987_v26 }
 0x560   :  { %2341 = vmatpush1.bf16.msra.mxu0 %v3989_v5  ;;  %2382 = vmatpush1.bf16.msra.mxu1 %v3991_v11 }
 0x561   :  { %2342 = vmatprep.subr.bf16.mxu0 %v3997_v58  ;;  %2383 = vmatprep.subr.bf16.mxu1 %v3999_v14 }
 0x564   :  { %2343 = vmatpush1.bf16.msra.mxu0 %v4001_v9  ;;  %2384 = vmatpush1.bf16.msra.mxu1 %v4003_v6 }
 0x565   :  { %2344 = vmatprep.subr.bf16.mxu0 %v4009_v62  ;;  %2385 = vmatprep.subr.bf16.mxu1 %v4011_v59 }
 0x568   :  { %2345 = vmatpush1.bf16.msra.mxu0 %v4013_v60  ;;  %2386 = vmatpush1.bf16.msra.mxu1 %v4015_v4 }
 0x569   :  { %2346 = vmatprep.subr.bf16.mxu0 %v3933_v17  ;;  %2387 = vmatprep.subr.bf16.mxu1 %v4022_v28 }
 0x56c   :  { %2347 = vmatpush1.bf16.msra.mxu0 %v3935_v18  ;;  %2388 = vmatpush1.bf16.msra.mxu1 %v4024_v29 }
 0x56d   :  { %2348 = vmatprep.subr.bf16.mxu0 %v3939_v19  ;;  %2389 = vmatprep.subr.bf16.mxu1 %v4030_v24  ;;  %v4226_v19 = vld [vmem:[#allocation19_spill] sm:$0xff] }
 0x570   :  { %2349 = vmatpush1.bf16.msra.mxu0 %v3941_v20  ;;  %2390 = vmatpush1.bf16.msra.mxu1 %v4032_v25 }
 0x571   :  { %2350 = vmatprep.subr.bf16.mxu0 %v3945_v22  ;;  %2391 = vmatprep.subr.bf16.mxu1 %v4038_v27 }
 0x574   :  { %2351 = vmatpush1.bf16.msra.mxu0 %v3947_v23  ;;  %2392 = vmatpush1.bf16.msra.mxu1 %v4040_v37 }
 0x575   :  { %2634 = vmatprep.subr.bf16.mxu0 %v3961_v56  ;;  %2675 = vmatprep.subr.bf16.mxu1 %v3963_v2 }
 0x62a   :  { %v2069_v17 = vpop.f32.mrb[32].mxu0  ;;  %v2110_v18 = vpop.f32.mrb[40].mxu1 }
 0x62b   :  { %v2070_v33 = vadd.f32 %v2069_v17, %v4226_v19  ;;  %v2111_v20 = vadd.f32 %v2110_v18, %v4227_v48  ;;  %v2071_v49 = vpop.f32.mrb[33].mxu0  ;;  %v2112_v50 = vpop.f32.mrb[41].mxu1 }
 0x62c   :  { %v2072_v22 = vadd.f32 %v2071_v49, %v4228_v51  ;;  %v2113_v21 = vadd.f32 %v2112_v50, %v4229_v52  ;;  %v2073_v53 = vpop.f32.mrb[34].mxu0  ;;  %v2114_v23 = vpop.f32.mrb[42].mxu1 }
 0x62d   :  { %v2117_v54 = vmul.f32 0.5, %v2070_v33  ;;  %v2074_v55 = vpop.f32.mrb[35].mxu0  ;;  %v2115_v35 = vpop.f32.mrb[43].mxu1 }
 0x62e   :  { %v2121_v56 = vmul.f32 0.5, %v2072_v22  ;;  %v2126_v2 = vmul.f32 0.5, %v2113_v21  ;;  %v3344_v55 = vld [vmem:[#allocation9 + $0x8] sm:$0xff]   ;;  %v2741_v35 = vld [vmem:[#allocation5] sm:$0xff] }
 0x62f   :  { %3401 = vtanh.f32 %v2117_v54 }
 0x630   :  { %3403 = vtanh.f32 %v2121_v56  ;;  %v3345_v56 = vld [vmem:[#allocation9 + $0x10] sm:$0xff]  }
 0x631   :  { %3405 = vtanh.f32 %v2111_v20 }
 0x632   :  { %3407 = vtanh.f32 %v2126_v2  ;;  %v3346_v2 = vld [vmem:[#allocation9 + $0x18] sm:$0xff]  }
 0x639   :  { %v3402_v1 = vpop.eup %3401 }
 0x63a   :  { %v3404_v30 = vpop.eup %3403  ;;  %v2119_v57 = vmul.f32 0.5, %v3402_v1  ;;  %v3347_v1 = vld [vmem:[#allocation9 + $0x20] sm:$0xff]  }
 0x63b   :  { %v2123_v0 = vmul.f32 0.5, %v3404_v30  ;;  %v3406_v61 = vpop.eup %3405  ;;  %v3348_v30 = vld [vmem:[#allocation9 + $0x28] sm:$0xff]  }
 0x63c   :  { %v2120_v13 = vadd.f32 0.5, %v2119_v57  ;;  %v3408_v40 = vpop.eup %3407  ;;  %v3349_v57 = vld [vmem:[#allocation9 + $0x30] sm:$0xff]  }
 0x63d   :  { %v2124_v31 = vadd.f32 0.5, %v2123_v0  ;;  %v2128_v41 = vmul.f32 0.5, %v3408_v40  ;;  %v3350_v0 = vld [vmem:[#allocation9 + $0x38] sm:$0xff]  }
 0x63e   :  { %v2131_v63 = vmul.f32 %v3406_v61, %v2120_v13  ;;  %v2742_v13 = vld [vmem:[#allocation5 + $0x8] sm:$0xff] }
 0x63f   :  { %v2130_v34 = vmul.f32 %v2124_v31, %v4094_v42  ;;  %v2129_v32 = vadd.f32 0.5, %v2128_v41 }
 0x641   :  { %v4136_v39 = vadd.f32 %v2131_v63, %v2130_v34  ;;  %v4234_v34 = vld [vmem:[#allocation27_spill] sm:$0xff] }
 0x643   :  { %3409 = vtanh.f32 %v4136_v39 }
 0x64d   :  { %v3410_v43 = vpop.eup %3409 }
 0x64e   :  { %v2134_v44 = vmul.f32 %v3410_v43, %v2129_v32  ;;  %v4235_v43 = vld [vmem:[#allocation29_spill] sm:$0xff] }
 0x650   :  { %v2135_v45 = vpack.c.bf16 %v2134_v44, %v2134_v44 }
 0x652   :  { %v2137_v46 = vrot.slane %v2135_v45, 4  ;;  %2369 = vmatmul.mubr.bf16.vlgmr.msra.gmra.mrb[36].mxu0 %v2135_v45  ;;  %2410 = vmatmul.mubr.bf16.vlgmr.msra.gmra.mrb[44].mxu1 %v2135_v45  ;;  %v4236_v45 = vld [vmem:[#allocation30_spill] sm:$0xff] }
 0x653   :  { %2635 = vmatpush1.bf16.msra.mxu0 %v3965_v8  ;;  %2676 = vmatpush1.bf16.msra.mxu1 %v3967_v15  ;;  %v3334_v8 = vld [vmem:[#allocation6 + $0xa0] ss:$16 sps:$4 sm:$0xff]   ;;  %v3339_v15 = vld [vmem:[#allocation6 + $0xc4] ss:$16 sps:$4 sm:$0xff]  }
 0x654   :  { %2139 = vst [vmem:[#allocation5 + $0x10] sm:$0xf0] %v2137_v46  ;;  %2636 = vmatprep.subr.bf16.mxu0 %v3973_v36  ;;  %2677 = vmatprep.subr.bf16.mxu1 %v3975_v3  ;;  %v3337_v36 = vld [vmem:[#allocation6 + $0xc0] ss:$16 sps:$4 sm:$0xff]   ;;  %v3342_v3 = vld [vmem:[#allocation6 + $0xe4] ss:$16 sps:$4 sm:$0xff]  }
 0x655   :  { %2666 = vmatprep.mubr.bf16.mxu0 %v4220_v16  ;;  %2707 = vmatprep.mubr.bf16.mxu1 %v4220_v16  ;;  %v3336_v16 = vld [vmem:[#allocation6 + $0xa4] ss:$16 sps:$4 sm:$0xff]  }
 0x657   :  { %2637 = vmatpush1.bf16.msra.mxu0 %v3977_v7  ;;  %2678 = vmatpush1.bf16.msra.mxu1 %v3979_v10  ;;  %v3340_v7 = vld [vmem:[#allocation6 + $0xe0] ss:$16 sps:$4 sm:$0xff]  }
 0x658   :  { %2638 = vmatprep.subr.bf16.mxu0 %v3985_v12  ;;  %2679 = vmatprep.subr.bf16.mxu1 %v3987_v26  ;;  %v3343_v10 = vld [vmem:[#allocation9] sm:$0xff]  }
 0x65b   :  { %2639 = vmatpush1.bf16.msra.mxu0 %v3989_v5  ;;  %2680 = vmatpush1.bf16.msra.mxu1 %v3991_v11  ;;  %v4230_v5 = vld [vmem:[#allocation24_spill] sm:$0xff]  ;;  %v2743_v61 = vld [vmem:[#allocation5 + $0x10] sm:$0xff] }
 0x65c   :  { %2640 = vmatprep.subr.bf16.mxu0 %v3997_v58  ;;  %2681 = vmatprep.subr.bf16.mxu1 %v3999_v14  ;;  %v4231_v58 = vld [vmem:[#allocation26_spill] sm:$0xff] }
 0x65f   :  { %2641 = vmatpush1.bf16.msra.mxu0 %v4001_v9  ;;  %2682 = vmatpush1.bf16.msra.mxu1 %v4003_v6 }
 0x660   :  { %2642 = vmatprep.subr.bf16.mxu0 %v4009_v62  ;;  %2683 = vmatprep.subr.bf16.mxu1 %v4011_v59  ;;  %v4232_v62 = vld [vmem:[#allocation25_spill] sm:$0xff] }
 0x663   :  { %2643 = vmatpush1.bf16.msra.mxu0 %v4013_v60  ;;  %2684 = vmatpush1.bf16.msra.mxu1 %v4015_v4  ;;  %v4233_v60 = vld [vmem:[#allocation28_spill] sm:$0xff] }
 0x664   :  { %2685 = vmatprep.subr.bf16.mxu1 %v4022_v28  ;;  %2644 = vmatprep.subr.bf16.mxu0 %v3336_v16 }
 0x667   :  { %2686 = vmatpush1.bf16.msra.mxu1 %v4024_v29  ;;  %2645 = vmatpush1.bf16.msra.mxu0 %v3334_v8 }
 0x668   :  { %2687 = vmatprep.subr.bf16.mxu1 %v4030_v24  ;;  %2646 = vmatprep.subr.bf16.mxu0 %v3339_v15 }
 0x66b   :  { %2688 = vmatpush1.bf16.msra.mxu1 %v4032_v25  ;;  %2647 = vmatpush1.bf16.msra.mxu0 %v3337_v36 }
 0x66c   :  { %2689 = vmatprep.subr.bf16.mxu1 %v4038_v27  ;;  %2648 = vmatprep.subr.bf16.mxu0 %v3342_v3 }
 0x66f   :  { %2690 = vmatpush1.bf16.msra.mxu1 %v4040_v37  ;;  %2649 = vmatpush1.bf16.msra.mxu0 %v3340_v7 }
 0x670   :  { %3198 = vmatprep.subr.bf16.mxu0 %v3343_v10 }
 0x725   :  { %v2370_v12 = vpop.f32.mrb[36].mxu0  ;;  %v2411_v26 = vpop.f32.mrb[44].mxu1 }
 0x726   :  { %v2371_v11 = vadd.f32 %v2370_v12, %v4230_v5  ;;  %v2412_v14 = vadd.f32 %v2411_v26, %v4231_v58  ;;  %v2372_v9 = vpop.f32.mrb[37].mxu0  ;;  %v2413_v6 = vpop.f32.mrb[45].mxu1 }
 0x727   :  { %v2373_v59 = vadd.f32 %v2372_v9, %v4232_v62  ;;  %v2414_v4 = vadd.f32 %v2413_v6, %v4233_v60  ;;  %v2374_v28 = vpop.f32.mrb[38].mxu0  ;;  %v2415_v29 = vpop.f32.mrb[46].mxu1 }
 0x728   :  { %v2418_v24 = vmul.f32 0.5, %v2371_v11  ;;  %v2375_v25 = vpop.f32.mrb[39].mxu0  ;;  %v2416_v27 = vpop.f32.mrb[47].mxu1 }
 0x729   :  { %v2422_v37 = vmul.f32 0.5, %v2373_v59  ;;  %v2427_v42 = vmul.f32 0.5, %v2414_v4  ;;  %v3177_v4 = vld [vmem:[%s4200_s7] ss:$0 sm:$0xff]  ;;  %s3511_s7 = smov [#allocation11]  }
 0x72a   :  { %3411 = vtanh.f32 %v2418_v24  ;;  %s2894_s22 = sshll.u32 %s3511_s7, 4  ;;  %s2895_s22 = int_to_ptr.vmem [resolvable:$true] %s2894_s22 }
 0x72b   :  { %3413 = vtanh.f32 %v2422_v37  ;;  %s3475_s23 = scalar_lea.vmem %s2895_s22, 1024  ;;  %p3480_p3 = scmp.lt.s32.totalorder %s2895_s22, %s2895_s22 }
 0x72c   :  { %3415 = vtanh.f32 %v2412_v14  ;;  %p3476_p2 = scmp.ne.s32.totalorder %s2895_s22, %s3475_s23  ;;  %p3481_p4 = scmp.lt.s32.totalorder %s3475_s23, %s3475_s23 }
 0x72d   :  { %3417 = vtanh.f32 %v2427_v42 }
 0x72e   :  { %p3482_p5 = por %p3481_p4, %p3480_p3 }
 0x730   :  { %p3483_p6 = pnand %p3482_p5, %p3476_p2 }
 0x734   :  { %v3412_v47 = vpop.eup %3411 }
 0x735   :  { %v3414_v17 = vpop.eup %3413  ;;  %v2420_v18 = vmul.f32 0.5, %v3412_v47 }
 0x736   :  { %v2424_v19 = vmul.f32 0.5, %v3414_v17  ;;  %v3416_v48 = vpop.eup %3415 }
 0x737   :  { %v2421_v33 = vadd.f32 0.5, %v2420_v18  ;;  %v3418_v22 = vpop.eup %3417 }
 0x738   :  { %v2425_v20 = vadd.f32 0.5, %v2424_v19  ;;  %v2429_v52 = vmul.f32 0.5, %v3418_v22 }
 0x739   :  { %v2432_v49 = vmul.f32 %v3416_v48, %v2421_v33 }
 0x73a   :  { %v2431_v50 = vmul.f32 %v2425_v20, %v4136_v39  ;;  %v2430_v21 = vadd.f32 0.5, %v2429_v52 }
 0x73c   :  { %v4170_v51 = vadd.f32 %v2432_v49, %v2431_v50 }
 0x73e   :  { %3419 = vtanh.f32 %v4170_v51 }
 0x748   :  { %v3420_v53 = vpop.eup %3419 }
 0x749   :  { %v2435_v23 = vmul.f32 %v3420_v53, %v2430_v21 }
 0x74b   :  { %v2436_v54 = vpack.c.bf16 %v2435_v23, %v2435_v23 }
 0x74d   :  { %2437 = vst [vmem:[#allocation5 + $0x18] sm:$0xf] %v2436_v54  ;;  %2667 = vmatmul.mubr.bf16.vlgmr.msra.gmra.mrb[40].mxu0 %v2436_v54  ;;  %2708 = vmatmul.mubr.bf16.vlgmr.msra.gmra.mrb[48].mxu1 %v2436_v54 }
 0x74e   :  { %3199 = vmatpush3.bf16.msra.mxu0 %v3343_v10  ;;  %3214 = vmatprep.mubr.bf16.mxu0 %v2741_v35 }
 0x74f   :  { %3200 = vmatprep.subr.bf16.mxu0 %v3344_v55 }
 0x752   :  { %3201 = vmatpush3.bf16.msra.mxu0 %v3344_v55 }
 0x753   :  { %3202 = vmatprep.subr.bf16.mxu0 %v3345_v56 }
 0x756   :  { %3203 = vmatpush3.bf16.msra.mxu0 %v3345_v56 }
 0x757   :  { %3204 = vmatprep.subr.bf16.mxu0 %v3346_v2 }
 0x75a   :  { %3205 = vmatpush3.bf16.msra.mxu0 %v3346_v2 }
 0x75b   :  { %3206 = vmatprep.subr.bf16.mxu0 %v3347_v1 }
 0x75e   :  { %3207 = vmatpush3.bf16.msra.mxu0 %v3347_v1 }
 0x75f   :  { %3208 = vmatprep.subr.bf16.mxu0 %v3348_v30 }
 0x762   :  { %3209 = vmatpush3.bf16.msra.mxu0 %v3348_v30 }
 0x763   :  { %3210 = vmatprep.subr.bf16.mxu0 %v3349_v57 }
 0x766   :  { %3211 = vmatpush3.bf16.msra.mxu0 %v3349_v57 }
 0x767   :  { %3212 = vmatprep.subr.bf16.mxu0 %v3350_v0 }
 0x76a   :  { %3213 = vmatpush3.bf16.msra.mxu0 %v3350_v0 }
 0x76d   :  { %3215 = vmatmul.mubr.bf16.vlgmr.msra.gmra.mrb[44].mxu0 %v2742_v13 }
 0x76e   :  { %3218 = vmatprep.mubr.bf16.mxu0 %v2743_v61 }
 0x820   :  { %v2668_v31 = vpop.f32.mrb[40].mxu0  ;;  %v2709_v63 = vpop.f32.mrb[48].mxu1 }
 0x821   :  { %v2669_v39 = vadd.f32 %v2668_v31, %v4234_v34  ;;  %v2710_v40 = vadd.f32 %v2709_v63, %v3850_v38  ;;  %v2670_v41 = vpop.f32.mrb[41].mxu0  ;;  %v2711_v32 = vpop.f32.mrb[49].mxu1 }
 0x822   :  { %v2671_v44 = vadd.f32 %v2670_v41, %v4235_v43  ;;  %v2712_v46 = vadd.f32 %v2711_v32, %v4236_v45  ;;  %v2672_v16 = vpop.f32.mrb[42].mxu0  ;;  %v2713_v8 = vpop.f32.mrb[50].mxu1 }
 0x823   :  { %v2716_v15 = vmul.f32 0.5, %v2669_v39  ;;  %v2673_v36 = vpop.f32.mrb[43].mxu0  ;;  %v2714_v3 = vpop.f32.mrb[51].mxu1 }
 0x824   :  { %v2720_v7 = vmul.f32 0.5, %v2671_v44  ;;  %v2725_v10 = vmul.f32 0.5, %v2712_v46 }
 0x825   :  { %3421 = vtanh.f32 %v2716_v15 }
 0x826   :  { %3423 = vtanh.f32 %v2720_v7 }
 0x827   :  { %3425 = vtanh.f32 %v2710_v40 }
 0x828   :  { %3427 = vtanh.f32 %v2725_v10 }
 0x82f   :  { %v3422_v12 = vpop.eup %3421 }
 0x830   :  { %v3424_v26 = vpop.eup %3423  ;;  %v2718_v5 = vmul.f32 0.5, %v3422_v12 }
 0x831   :  { %v2722_v38 = vmul.f32 0.5, %v3424_v26  ;;  %v3426_v58 = vpop.eup %3425 }
 0x832   :  { %v2719_v11 = vadd.f32 0.5, %v2718_v5  ;;  %v3428_v59 = vpop.eup %3427 }
 0x833   :  { %v2723_v14 = vadd.f32 0.5, %v2722_v38  ;;  %v2727_v60 = vmul.f32 0.5, %v3428_v59 }
 0x834   :  { %v2730_v9 = vmul.f32 %v3426_v58, %v2719_v11 }
 0x835   :  { %v2729_v6 = vmul.f32 %v2723_v14, %v4170_v51  ;;  %v2728_v25 = vadd.f32 0.5, %v2727_v60 }
 0x837   :  { %v2731_v62 = vadd.f32 %v2730_v9, %v2729_v6 }
 0x839   :  { %3429 = vtanh.f32 %v2731_v62 }
 0x840   :  { %v3216_v28 = vpop.f32.mrb[44].mxu0 }
 0x841   :  { %v2859_v29 = vadd.f32 %v3216_v28, %v3177_v4  ;;  %v2850_v24 = vpop.f32.mrb[45].mxu0 }
 0x842   :  { %v2851_v27 = vadd.f32 %v3177_v4, %v2850_v24  ;;  %v3217_v37 = vpop.f32.mrb[46].mxu0 }
 0x843   :  { %v3430_v42 = vpop.eup %3429  ;;  %2883 = vst [vmem:[#allocation11 + $0x10] sm:$0xff] %v2859_v29  ;;  %v2862_v47 = vadd.f32 %v3217_v37, %v3177_v4  ;;  %v2853_v17 = vpop.f32.mrb[47].mxu0 }
 0x844   :  { %v2733_v18 = vmul.f32 %v3430_v42, %v2728_v25  ;;  %2881 = vst [vmem:[#allocation11] sm:$0xff] %v2851_v27  ;;  %v2854_v19 = vadd.f32 %v3177_v4, %v2853_v17 }
 0x845   :  { %2884 = vst [vmem:[#allocation11 + $0x18] sm:$0xff] %v2862_v47 }
 0x846   :  { %v2734_v33 = vpack.c.bf16 %v2733_v18, %v2733_v18  ;;  %2882 = vst [vmem:[#allocation11 + $0x8] sm:$0xff] %v2854_v19 }
 0x848   :  { %v2736_v48 = vrot.slane %v2734_v33, 4 }
 0x84a   :  { %2738 = vst [vmem:[#allocation5 + $0x18] sm:$0xf0] %v2736_v48 }
 0x851   :  { %v2744_v20 = vld [vmem:[#allocation5 + $0x18] sm:$0xff] }
 0x852   :  { %3219 = vmatmul.mubr.bf16.gmra.mrb[48].mxu0 %v2744_v20 }
 0x925   :  { %v3220_v49 = vpop.f32.mrb[48].mxu0 }
 0x926   :  { %v2875_v50 = vadd.f32 %v3220_v49, %v3177_v4  ;;  %v2866_v51 = vpop.f32.mrb[49].mxu0 }
 0x927   :  { %v2867_v22 = vadd.f32 %v3177_v4, %v2866_v51  ;;  %v3221_v52 = vpop.f32.mrb[50].mxu0 }
 0x928   :  { %2887 = vst [vmem:[#allocation11 + $0x30] sm:$0xff] %v2875_v50  ;;  %v2878_v21 = vadd.f32 %v3221_v52, %v3177_v4  ;;  %v2869_v53 = vpop.f32.mrb[51].mxu0 }
 0x929   :  { %2885 = vst [vmem:[#allocation11 + $0x20] sm:$0xff] %v2867_v22  ;;  %v2870_v23 = vadd.f32 %v3177_v4, %v2869_v53 }
 0x92a   :  { %2888 = vst [vmem:[#allocation11 + $0x38] sm:$0xff] %v2878_v21 }
 0x92b   :  { %2886 = vst [vmem:[#allocation11 + $0x28] sm:$0xff] %v2870_v23 }
 0x92c   :  { %3486 = shalt.err (!%p3483_p6)
}
 0x92d   :  { %s3487_s26 = scalar_lea.hbm %s4201_s8, 1024 }
 0x92e   :  { %p3488_p7 = scmp.ne.s32.totalorder %s4201_s8, %s3487_s26  ;;  %p3491_p8 = scmp.lt.u32.totalorder %s3487_s26, %s4201_s8 }
 0x930   :  { %p3493_p9 = pnand %p3491_p8, %p3488_p7 }
 0x932   :  { %3496 = shalt.err (!%p3493_p9)
}
 0x933   :  { %s3512_s30 = smov 128   ;;  %s3513_s9 = smov 8  }
 0x934   :  { %2900 = dma.vmem_to_hbm [thread:$0]  %s2895_s22, 1024, %s4201_s8, [#allocation8], %s3512_s30, %s3512_s30, %s3513_s9  }
 0x935   :  { %3501 = dma.done.wait [#allocation8], 1024  }
 0x936   :  { %3502 = vsyncadd [#allocation8], 4294966272 }
 0x937   :  { %2904 = vsyncpa [#allocation7], 1 }
 0x938   :  { %2905 = vsyncpa [#allocation10], 1 }
 0x939   :  { %2906 = vsyncpa [#allocation8], 1 }

</bundles_post_ra>
